<compile_context>
chip_gen: v7x
topology: tpu7x:2x2x1
jax: 0.10.0
libtpu: 0.0.40
codegen_flags: <defaults>
</compile_context>

<pallas_src>
import math
import functools

import jax
import jax.numpy as jnp
from jax import lax
from jax.experimental import pallas as pl
from jax.experimental.pallas import tpu as pltpu


def _layer_norm_f32(x, gamma, beta, eps=1e-5):
    """F.layer_norm over the last dim; statistics computed in f32 (VPU)."""
    xf = x.astype(jnp.float32)
    mean = jnp.mean(xf, axis=-1, keepdims=True)
    xc = xf - mean
    var = jnp.mean(xc * xc, axis=-1, keepdims=True)
    inv = lax.rsqrt(var + eps)
    return xc * inv * gamma + beta


def _gelu_tanh(x):
    # TODO(synk): PyTorch nn.GELU() defaults to the exact erf form; the tanh
    # approximation (max abs error ~3e-4) is used because tanh lowers to the
    # EUP on all TPU generations.
    c = math.sqrt(2.0 / math.pi)
    return 0.5 * x * (1.0 + jnp.tanh(c * (x + 0.044715 * x * x * x)))


def transformer_block_kernel(
        x_ref,
        ln1_g_ref, ln1_b_ref,
        wqkv_t_ref, bqkv_ref,
        wproj_t_ref, bproj_ref,
        ln2_g_ref, ln2_b_ref,
        wfc_t_ref, bfc_ref,
        wcproj_t_ref, bcproj_ref,
        o_ref,
        qkv_scr, q_scr, k_scr, v_scr, y_scr, att_scr,
        *, num_head):
    """One grid step = one batch element, fully resident in VMEM."""
    x = x_ref[0]                                        # (T, C), input dtype
    T, C = x.shape
    D = C // num_head
    cdt = wqkv_t_ref.dtype                              # MXU operand dtype

    # ---------------- ln_1 ----------------
    h = _layer_norm_f32(x, ln1_g_ref[...], ln1_b_ref[...]).astype(cdt)

    # ------- fused QKV projection (1/sqrt(D) pre-folded into Q columns) ------
    qkv = jnp.dot(h, wqkv_t_ref[...],
                  preferred_element_type=jnp.float32) + bqkv_ref[...]  # (T,3C) f32
    # Single cast + single store; every per-head read below is a plain vld of
    # a VMEM ref slice (no lane extracts of a live f32 value, no re-casts).
    qkv_scr[...] = qkv.astype(cdt)

    # ---- stage q/k/v head-major: static lane slices of a ref -> (H, T, D) ----
    for hh in range(num_head):
        lo = hh * D
        q_scr[hh] = qkv_scr[:, 0 * C + lo: 0 * C + lo + D]
        k_scr[hh] = qkv_scr[:, 1 * C + lo: 1 * C + lo + D]
        v_scr[hh] = qkv_scr[:, 2 * C + lo: 2 * C + lo + D]

    # ---------------- causal multi-head attention ----------------
    row = lax.broadcasted_iota(jnp.int32, (T, T), 0)
    col = lax.broadcasted_iota(jnp.int32, (T, T), 1)
    causal = col <= row

    # One head per fori_loop step: bounds the per-head live set (scores, exp,
    # (T,D) temps) instead of keeping all heads live in an unrolled loop.
    # Only dynamic leading-dim ref indexing is used inside the loop.
    def head_body(hh, carry):
        q_h = q_scr[hh]                                  # (T, D)
        k_h = k_scr[hh]
        v_h = v_scr[hh]
        # q_h @ k_h.T without materializing a transpose: contract dim 1 of both.
        s = lax.dot_general(q_h, k_h, (((1,), (1,)), ((), ())),
                            preferred_element_type=jnp.float32)       # (T, T)
        # Large finite negative instead of -inf (safe for a future KV-tiled
        # flash variant; the causal diagonal is never fully masked).
        s = jnp.where(causal, s, -1e30)
        m = jnp.max(s, axis=-1, keepdims=True)
        e = jnp.exp(s - m)
        l = jnp.sum(e, axis=-1, keepdims=True)
        p = (e * pl.reciprocal(l, approx=True)).astype(cdt)           # softmax
        y_scr[hh] = jnp.dot(p, v_h,
                            preferred_element_type=jnp.float32).astype(cdt)
        return carry

    lax.fori_loop(0, num_head, head_body, 0)

    # ---- repack heads onto lanes (static offsets), then ONE K=C projection ---
    for hh in range(num_head):
        att_scr[:, hh * D:(hh + 1) * D] = y_scr[hh]

    att_out = jnp.dot(att_scr[...], wproj_t_ref[...],
                      preferred_element_type=jnp.float32) + bproj_ref[...]
    x1 = x.astype(jnp.float32) + att_out                 # (T, C) f32 residual

    # ---------------- ln_2 ----------------
    h2 = _layer_norm_f32(x1, ln2_g_ref[...], ln2_b_ref[...]).astype(cdt)

    # ---------------- MLP: fc -> GELU -> proj ----------------
    fc = jnp.dot(h2, wfc_t_ref[...],
                 preferred_element_type=jnp.float32) + bfc_ref[...]   # (T, 4C)
    act = _gelu_tanh(fc).astype(cdt)
    mlp_out = jnp.dot(act, wcproj_t_ref[...],
                      preferred_element_type=jnp.float32) + bcproj_ref[...]

    o_ref[0] = (x1 + mlp_out).astype(o_ref.dtype)


def transformer_block(x, params, *, num_head, compute_dtype=None,
                      single_buffer_weights=True):
    """x: (B, T, C).  params follow PyTorch nn.Linear convention
    (W: (out, in), y = x @ W.T + b).  Weights are pre-transposed (and cast to
    `compute_dtype`) here so the kernel never transposes or re-casts a weight.
    compute_dtype=None -> use x.dtype; pass jnp.bfloat16 for the MXU-native
    production config (f32 accumulation / LN / softmax stats are kept)."""
    B, T, C = x.shape
    D = C // num_head
    cdt = jnp.dtype(compute_dtype) if compute_dtype is not None else x.dtype
    scale = 1.0 / math.sqrt(D)

    # Fold 1/sqrt(D) into the Q columns of Wqkv^T and b_qkv (static weights).
    col_scale = jnp.concatenate([jnp.full((C,), scale, jnp.float32),
                                 jnp.ones((2 * C,), jnp.float32)])
    wqkv_t = (jnp.transpose(params["w_qkv"]).astype(jnp.float32)
              * col_scale[None, :]).astype(cdt)                       # (C, 3C)
    wproj_t = jnp.transpose(params["w_proj"]).astype(cdt)             # (C, C)
    wfc_t = jnp.transpose(params["w_fc"]).astype(cdt)                 # (C, 4C)
    wcproj_t = jnp.transpose(params["w_cproj"]).astype(cdt)           # (4C, C)

    row2d = lambda v: v.reshape(1, -1).astype(jnp.float32)
    ln1_g, ln1_b = row2d(params["ln1_g"]), row2d(params["ln1_b"])
    ln2_g, ln2_b = row2d(params["ln2_g"]), row2d(params["ln2_b"])
    bqkv = row2d(params["b_qkv"] * col_scale)
    bproj = row2d(params["b_proj"])
    bfc, bcproj = row2d(params["b_fc"]), row2d(params["b_cproj"])

    kernel = functools.partial(transformer_block_kernel, num_head=num_head)
    args = (x, ln1_g, ln1_b, wqkv_t, bqkv, wproj_t, bproj,
            ln2_g, ln2_b, wfc_t, bfc, wcproj_t, bcproj)

    def _run(single_buffer):
        # Constant-index (weight/bias) blocks; resident across the whole grid.
        # With single_buffer we ask the pipeline not to double-buffer them.
        if single_buffer:
            const = lambda shape: pl.BlockSpec(shape, lambda b: (0, 0),
                                               pipeline_mode=pl.Buffered(1))
        else:
            const = lambda shape: pl.BlockSpec(shape, lambda b: (0, 0))

        # VMEM budget from the actual resident footprint (+50% headroom).
        itemsize = jnp.dtype(cdt).itemsize
        weight_bytes = 12 * C * C * itemsize * (1 if single_buffer else 2)
        io_bytes = 2 * 2 * T * C * x.dtype.itemsize        # x + out, dbl-buffered
        scratch_bytes = 8 * T * C * itemsize                # qkv + q/k/v/y + att
        budget = int(1.5 * (weight_bytes + io_bytes + scratch_bytes)) + (8 << 20)
        vmem_limit = max(32 << 20, min(budget, 96 << 20))

        return pl.pallas_call(
            kernel,
            out_shape=jax.ShapeDtypeStruct((B, T, C), x.dtype),
            grid_spec=pltpu.PrefetchScalarGridSpec(
                num_scalar_prefetch=0,
                grid=(B,),
                in_specs=[
                    pl.BlockSpec((1, T, C), lambda b: (b, 0, 0)),   # x
                    const((1, C)), const((1, C)),                   # ln_1 g/b
                    const((C, 3 * C)), const((1, 3 * C)),           # Wqkv^T, b
                    const((C, C)), const((1, C)),                   # Wproj^T, b
                    const((1, C)), const((1, C)),                   # ln_2 g/b
                    const((C, 4 * C)), const((1, 4 * C)),           # Wfc^T, b
                    const((4 * C, C)), const((1, C)),               # Wcproj^T, b
                ],
                out_specs=pl.BlockSpec((1, T, C), lambda b: (b, 0, 0)),
                scratch_shapes=[
                    pltpu.VMEM((T, 3 * C), cdt),              # qkv staging
                    pltpu.VMEM((num_head, T, D), cdt),        # q (head-major)
                    pltpu.VMEM((num_head, T, D), cdt),        # k
                    pltpu.VMEM((num_head, T, D), cdt),        # v
                    pltpu.VMEM((num_head, T, D), cdt),        # per-head y
                    pltpu.VMEM((T, C), cdt),                  # repacked y (T,C)
                ],
            ),
            compiler_params=pltpu.CompilerParams(
                dimension_semantics=("parallel",),
                vmem_limit_bytes=vmem_limit,
            ),
        )(*args)

    if single_buffer_weights:
        try:
            return _run(True)
        except Exception:
            # pipeline_mode=pl.Buffered(1) not supported by this jax version;
            # fall back to default (double-buffered) constant specs.
            pass
    return _run(False)


def reference_block(x, p, num_head):
    """Plain-JAX mirror of the PyTorch Block forward (eval mode)."""
    eps = 1e-5

    def ln(z, g, b):
        mean = z.mean(-1, keepdims=True)
        var = ((z - mean) ** 2).mean(-1, keepdims=True)
        return (z - mean) / jnp.sqrt(var + eps) * g + b

    B, T, C = x.shape
    D = C // num_head

    h = ln(x, p["ln1_g"], p["ln1_b"])
    qkv = h @ p["w_qkv"].T + p["b_qkv"]
    q, k, v = jnp.split(qkv, 3, axis=2)
    q = q.reshape(B, T, num_head, D).transpose(0, 2, 1, 3)
    k = k.reshape(B, T, num_head, D).transpose(0, 2, 1, 3)
    v = v.reshape(B, T, num_head, D).transpose(0, 2, 1, 3)
    att = (q @ k.transpose(0, 1, 3, 2)) / math.sqrt(D)
    mask = jnp.tril(jnp.ones((T, T), dtype=bool))
    att = jnp.where(mask[None, None], att, -jnp.inf)
    att = jax.nn.softmax(att, axis=-1)
    y = (att @ v).transpose(0, 2, 1, 3).reshape(B, T, C)
    x = x + y @ p["w_proj"].T + p["b_proj"]

    h2 = ln(x, p["ln2_g"], p["ln2_b"])
    fc = h2 @ p["w_fc"].T + p["b_fc"]
    c = math.sqrt(2.0 / math.pi)
    act = 0.5 * fc * (1.0 + jnp.tanh(c * (fc + 0.044715 * fc ** 3)))
    x = x + act @ p["w_cproj"].T + p["b_cproj"]
    return x


if __name__ == "__main__":
    # Config: num_embedding=32, num_head=4, block_size>=T, bias=True, dropout=0.0
    B, T, C, H = 2, 8, 32, 4

    key = jax.random.PRNGKey(0)
    ks = jax.random.split(key, 13)

    x = jax.random.normal(ks[0], (B, T, C), dtype=jnp.float32)
    params = {
        "ln1_g": 1.0 + 0.1 * jax.random.normal(ks[1], (C,), jnp.float32),
        "ln1_b": 0.02 * jax.random.normal(ks[2], (C,), jnp.float32),
        "w_qkv": jax.random.normal(ks[3], (3 * C, C), jnp.float32) / math.sqrt(C),
        "b_qkv": 0.02 * jax.random.normal(ks[4], (3 * C,), jnp.float32),
        "w_proj": jax.random.normal(ks[5], (C, C), jnp.float32) / math.sqrt(C),
        "b_proj": 0.02 * jax.random.normal(ks[6], (C,), jnp.float32),
        "ln2_g": 1.0 + 0.1 * jax.random.normal(ks[7], (C,), jnp.float32),
        "ln2_b": 0.02 * jax.random.normal(ks[8], (C,), jnp.float32),
        "w_fc": jax.random.normal(ks[9], (4 * C, C), jnp.float32) / math.sqrt(C),
        "b_fc": 0.02 * jax.random.normal(ks[10], (4 * C,), jnp.float32),
        "w_cproj": jax.random.normal(ks[11], (C, 4 * C), jnp.float32) / math.sqrt(4 * C),
        "b_cproj": 0.02 * jax.random.normal(ks[12], (C,), jnp.float32),
    }

    y_ref = reference_block(x, params, H)

    # f32 compute path (numerics match the PyTorch module closely).
    y = transformer_block(x, params, num_head=H)
    y = jax.block_until_ready(y)
    assert y.shape == (B, T, C)
    assert jnp.allclose(y, y_ref, atol=5e-3, rtol=5e-3), "f32 mismatch vs reference"

    # bf16 MXU-operand path (recommended production config: bf16 operands,
    # f32 accumulation / LN / softmax stats).
    y_bf16 = transformer_block(x, params, num_head=H, compute_dtype=jnp.bfloat16)
    y_bf16 = jax.block_until_ready(y_bf16)
    assert y_bf16.shape == (B, T, C)
    assert jnp.allclose(y_bf16, y_ref, atol=1e-1, rtol=1e-1), "bf16 mismatch vs reference"

    print("KERNEL_OK")
</pallas_src>

<mosaic_0001>
module attributes {stable_mosaic.version = 11 : i64} {
  func.func @transformer_block_kernel(%arg0: i32, %arg1: memref<1x8x32xf32, #tpu.memory_space<vmem>>, %arg2: memref<1x32xf32, #tpu.memory_space<vmem>>, %arg3: memref<1x32xf32, #tpu.memory_space<vmem>>, %arg4: memref<32x96xf32, #tpu.memory_space<vmem>>, %arg5: memref<1x96xf32, #tpu.memory_space<vmem>>, %arg6: memref<32x32xf32, #tpu.memory_space<vmem>>, %arg7: memref<1x32xf32, #tpu.memory_space<vmem>>, %arg8: memref<1x32xf32, #tpu.memory_space<vmem>>, %arg9: memref<1x32xf32, #tpu.memory_space<vmem>>, %arg10: memref<32x128xf32, #tpu.memory_space<vmem>>, %arg11: memref<1x128xf32, #tpu.memory_space<vmem>>, %arg12: memref<128x32xf32, #tpu.memory_space<vmem>>, %arg13: memref<1x32xf32, #tpu.memory_space<vmem>>, %arg14: memref<1x8x32xf32, #tpu.memory_space<vmem>>, %arg15: memref<8x96xf32, #tpu.memory_space<vmem>>, %arg16: memref<4x8x8xf32, #tpu.memory_space<vmem>>, %arg17: memref<4x8x8xf32, #tpu.memory_space<vmem>>, %arg18: memref<4x8x8xf32, #tpu.memory_space<vmem>>, %arg19: memref<4x8x8xf32, #tpu.memory_space<vmem>>, %arg20: memref<8x32xf32, #tpu.memory_space<vmem>>) attributes {dimension_semantics = [#tpu.dimension_semantics<parallel>], iteration_bounds = array<i64: 2>, scalar_prefetch = 0 : i64, scratch_operands = 6 : i64, tpu.core_type = #tpu.core_type<tc>, window_params = [{transform_indices = @transform_0, window_bounds = array<i64: 1, 8, 32>}, {pipeline_mode = #tpu.pipeline_mode<synchronous>, transform_indices = @transform_1, window_bounds = array<i64: 1, 32>}, {pipeline_mode = #tpu.pipeline_mode<synchronous>, transform_indices = @transform_2, window_bounds = array<i64: 1, 32>}, {pipeline_mode = #tpu.pipeline_mode<synchronous>, transform_indices = @transform_3, window_bounds = array<i64: 32, 96>}, {pipeline_mode = #tpu.pipeline_mode<synchronous>, transform_indices = @transform_4, window_bounds = array<i64: 1, 96>}, {pipeline_mode = #tpu.pipeline_mode<synchronous>, transform_indices = @transform_5, window_bounds = array<i64: 32, 32>}, {pipeline_mode = #tpu.pipeline_mode<synchronous>, transform_indices = @transform_6, window_bounds = array<i64: 1, 32>}, {pipeline_mode = #tpu.pipeline_mode<synchronous>, transform_indices = @transform_7, window_bounds = array<i64: 1, 32>}, {pipeline_mode = #tpu.pipeline_mode<synchronous>, transform_indices = @transform_8, window_bounds = array<i64: 1, 32>}, {pipeline_mode = #tpu.pipeline_mode<synchronous>, transform_indices = @transform_9, window_bounds = array<i64: 32, 128>}, {pipeline_mode = #tpu.pipeline_mode<synchronous>, transform_indices = @transform_10, window_bounds = array<i64: 1, 128>}, {pipeline_mode = #tpu.pipeline_mode<synchronous>, transform_indices = @transform_11, window_bounds = array<i64: 128, 32>}, {pipeline_mode = #tpu.pipeline_mode<synchronous>, transform_indices = @transform_12, window_bounds = array<i64: 1, 32>}, {transform_indices = @transform_13, window_bounds = array<i64: 1, 8, 32>}]} {
    %c0 = arith.constant 0 : index
    %c0_0 = arith.constant 0 : index
    %c0_1 = arith.constant 0 : index
    %0 = vector.load %arg1[%c0, %c0_0, %c0_1] : memref<1x8x32xf32, #tpu.memory_space<vmem>>, vector<1x8x32xf32>
    %1 = vector.shape_cast %0 : vector<1x8x32xf32> to vector<8x32xf32>
    %c0_2 = arith.constant 0 : index
    %c0_3 = arith.constant 0 : index
    %2 = vector.load %arg2[%c0_2, %c0_3] : memref<1x32xf32, #tpu.memory_space<vmem>>, vector<1x32xf32>
    %c0_4 = arith.constant 0 : index
    %c0_5 = arith.constant 0 : index
    %3 = vector.load %arg3[%c0_4, %c0_5] : memref<1x32xf32, #tpu.memory_space<vmem>>, vector<1x32xf32>
    %cst = arith.constant dense<0.000000e+00> : vector<8xf32>
    %4 = vector.multi_reduction <add>, %1, %cst [1] : vector<8x32xf32> to vector<8xf32>
    %5 = vector.shape_cast %4 : vector<8xf32> to vector<8x1xf32>
    %cst_6 = arith.constant 3.200000e+01 : f32
    %6 = vector.broadcast %cst_6 : f32 to vector<8x1xf32>
    %7 = arith.divf %5, %6 : vector<8x1xf32>
    %8 = vector.broadcast %7 : vector<8x1xf32> to vector<8x32xf32>
    %9 = arith.subf %1, %8 : vector<8x32xf32>
    %10 = arith.mulf %9, %9 : vector<8x32xf32>
    %cst_7 = arith.constant dense<0.000000e+00> : vector<8xf32>
    %11 = vector.multi_reduction <add>, %10, %cst_7 [1] : vector<8x32xf32> to vector<8xf32>
    %12 = vector.shape_cast %11 : vector<8xf32> to vector<8x1xf32>
    %cst_8 = arith.constant 3.200000e+01 : f32
    %13 = vector.broadcast %cst_8 : f32 to vector<8x1xf32>
    %14 = arith.divf %12, %13 : vector<8x1xf32>
    %cst_9 = arith.constant 9.99999974E-6 : f32
    %15 = vector.broadcast %cst_9 : f32 to vector<8x1xf32>
    %16 = arith.addf %14, %15 : vector<8x1xf32>
    %17 = math.rsqrt %16 : vector<8x1xf32>
    %18 = vector.broadcast %17 : vector<8x1xf32> to vector<8x32xf32>
    %19 = arith.mulf %9, %18 : vector<8x32xf32>
    %20 = vector.broadcast %2 : vector<1x32xf32> to vector<8x32xf32>
    %21 = arith.mulf %19, %20 : vector<8x32xf32>
    %22 = vector.broadcast %3 : vector<1x32xf32> to vector<8x32xf32>
    %23 = arith.addf %21, %22 : vector<8x32xf32>
    %c0_10 = arith.constant 0 : index
    %c0_11 = arith.constant 0 : index
    %24 = vector.load %arg4[%c0_10, %c0_11] : memref<32x96xf32, #tpu.memory_space<vmem>>, vector<32x96xf32>
    %cst_12 = arith.constant dense<0.000000e+00> : vector<8x96xf32>
    %25 = tpu.matmul %23, %24, %cst_12 {dimension_numbers = #tpu.dot_dimension_numbers<[1], [0], [0], [1], [0, 0, 1, 1], [], []>} : vector<8x32xf32>, vector<32x96xf32>, vector<8x96xf32> -> vector<8x96xf32>
    %c0_13 = arith.constant 0 : index
    %c0_14 = arith.constant 0 : index
    %26 = vector.load %arg5[%c0_13, %c0_14] : memref<1x96xf32, #tpu.memory_space<vmem>>, vector<1x96xf32>
    %27 = vector.broadcast %26 : vector<1x96xf32> to vector<8x96xf32>
    %28 = arith.addf %25, %27 : vector<8x96xf32>
    %c0_15 = arith.constant 0 : index
    %c0_16 = arith.constant 0 : index
    %29 = vector.load %arg15[%c0_15, %c0_16] : memref<8x96xf32, #tpu.memory_space<vmem>>, vector<8x96xf32>
    tpu.vector_store %arg15[%c0_15, %c0_16], %28 {strides = array<i32>} : memref<8x96xf32, #tpu.memory_space<vmem>>, vector<8x96xf32>,
    %c0_17 = arith.constant 0 : index
    %c0_18 = arith.constant 0 : index
    %30 = vector.load %arg15[%c0_17, %c0_18] : memref<8x96xf32, #tpu.memory_space<vmem>>, vector<8x8xf32>
    %c0_19 = arith.constant 0 : index
    %c0_20 = arith.constant 0 : index
    %c0_21 = arith.constant 0 : index
    %31 = vector.load %arg16[%c0_19, %c0_20, %c0_21] : memref<4x8x8xf32, #tpu.memory_space<vmem>>, vector<1x8x8xf32>
    %32 = vector.shape_cast %31 : vector<1x8x8xf32> to vector<8x8xf32>
    %33 = vector.shape_cast %30 : vector<8x8xf32> to vector<1x8x8xf32>
    tpu.vector_store %arg16[%c0_19, %c0_20, %c0_21], %33 {strides = array<i32>} : memref<4x8x8xf32, #tpu.memory_space<vmem>>, vector<1x8x8xf32>,
    %c0_22 = arith.constant 0 : index
    %c32 = arith.constant 32 : index
    %34 = vector.load %arg15[%c0_22, %c32] : memref<8x96xf32, #tpu.memory_space<vmem>>, vector<8x8xf32>
    %c0_23 = arith.constant 0 : index
    %c0_24 = arith.constant 0 : index
    %c0_25 = arith.constant 0 : index
    %35 = vector.load %arg17[%c0_23, %c0_24, %c0_25] : memref<4x8x8xf32, #tpu.memory_space<vmem>>, vector<1x8x8xf32>
    %36 = vector.shape_cast %35 : vector<1x8x8xf32> to vector<8x8xf32>
    %37 = vector.shape_cast %34 : vector<8x8xf32> to vector<1x8x8xf32>
    tpu.vector_store %arg17[%c0_23, %c0_24, %c0_25], %37 {strides = array<i32>} : memref<4x8x8xf32, #tpu.memory_space<vmem>>, vector<1x8x8xf32>,
    %c0_26 = arith.constant 0 : index
    %c64 = arith.constant 64 : index
    %38 = vector.load %arg15[%c0_26, %c64] : memref<8x96xf32, #tpu.memory_space<vmem>>, vector<8x8xf32>
    %c0_27 = arith.constant 0 : index
    %c0_28 = arith.constant 0 : index
    %c0_29 = arith.constant 0 : index
    %39 = vector.load %arg18[%c0_27, %c0_28, %c0_29] : memref<4x8x8xf32, #tpu.memory_space<vmem>>, vector<1x8x8xf32>
    %40 = vector.shape_cast %39 : vector<1x8x8xf32> to vector<8x8xf32>
    %41 = vector.shape_cast %38 : vector<8x8xf32> to vector<1x8x8xf32>
    tpu.vector_store %arg18[%c0_27, %c0_28, %c0_29], %41 {strides = array<i32>} : memref<4x8x8xf32, #tpu.memory_space<vmem>>, vector<1x8x8xf32>,
    %c0_30 = arith.constant 0 : index
    %c8 = arith.constant 8 : index
    %42 = vector.load %arg15[%c0_30, %c8] : memref<8x96xf32, #tpu.memory_space<vmem>>, vector<8x8xf32>
    %c1 = arith.constant 1 : index
    %c0_31 = arith.constant 0 : index
    %c0_32 = arith.constant 0 : index
    %43 = vector.load %arg16[%c1, %c0_31, %c0_32] : memref<4x8x8xf32, #tpu.memory_space<vmem>>, vector<1x8x8xf32>
    %44 = vector.shape_cast %43 : vector<1x8x8xf32> to vector<8x8xf32>
    %45 = vector.shape_cast %42 : vector<8x8xf32> to vector<1x8x8xf32>
    tpu.vector_store %arg16[%c1, %c0_31, %c0_32], %45 {strides = array<i32>} : memref<4x8x8xf32, #tpu.memory_space<vmem>>, vector<1x8x8xf32>,
    %c0_33 = arith.constant 0 : index
    %c40 = arith.constant 40 : index
    %46 = vector.load %arg15[%c0_33, %c40] : memref<8x96xf32, #tpu.memory_space<vmem>>, vector<8x8xf32>
    %c1_34 = arith.constant 1 : index
    %c0_35 = arith.constant 0 : index
    %c0_36 = arith.constant 0 : index
    %47 = vector.load %arg17[%c1_34, %c0_35, %c0_36] : memref<4x8x8xf32, #tpu.memory_space<vmem>>, vector<1x8x8xf32>
    %48 = vector.shape_cast %47 : vector<1x8x8xf32> to vector<8x8xf32>
    %49 = vector.shape_cast %46 : vector<8x8xf32> to vector<1x8x8xf32>
    tpu.vector_store %arg17[%c1_34, %c0_35, %c0_36], %49 {strides = array<i32>} : memref<4x8x8xf32, #tpu.memory_space<vmem>>, vector<1x8x8xf32>,
    %c0_37 = arith.constant 0 : index
    %c72 = arith.constant 72 : index
    %50 = vector.load %arg15[%c0_37, %c72] : memref<8x96xf32, #tpu.memory_space<vmem>>, vector<8x8xf32>
    %c1_38 = arith.constant 1 : index
    %c0_39 = arith.constant 0 : index
    %c0_40 = arith.constant 0 : index
    %51 = vector.load %arg18[%c1_38, %c0_39, %c0_40] : memref<4x8x8xf32, #tpu.memory_space<vmem>>, vector<1x8x8xf32>
    %52 = vector.shape_cast %51 : vector<1x8x8xf32> to vector<8x8xf32>
    %53 = vector.shape_cast %50 : vector<8x8xf32> to vector<1x8x8xf32>
    tpu.vector_store %arg18[%c1_38, %c0_39, %c0_40], %53 {strides = array<i32>} : memref<4x8x8xf32, #tpu.memory_space<vmem>>, vector<1x8x8xf32>,
    %c0_41 = arith.constant 0 : index
    %c16 = arith.constant 16 : index
    %54 = vector.load %arg15[%c0_41, %c16] : memref<8x96xf32, #tpu.memory_space<vmem>>, vector<8x8xf32>
    %c2 = arith.constant 2 : index
    %c0_42 = arith.constant 0 : index
    %c0_43 = arith.constant 0 : index
    %55 = vector.load %arg16[%c2, %c0_42, %c0_43] : memref<4x8x8xf32, #tpu.memory_space<vmem>>, vector<1x8x8xf32>
    %56 = vector.shape_cast %55 : vector<1x8x8xf32> to vector<8x8xf32>
    %57 = vector.shape_cast %54 : vector<8x8xf32> to vector<1x8x8xf32>
    tpu.vector_store %arg16[%c2, %c0_42, %c0_43], %57 {strides = array<i32>} : memref<4x8x8xf32, #tpu.memory_space<vmem>>, vector<1x8x8xf32>,
    %c0_44 = arith.constant 0 : index
    %c48 = arith.constant 48 : index
    %58 = vector.load %arg15[%c0_44, %c48] : memref<8x96xf32, #tpu.memory_space<vmem>>, vector<8x8xf32>
    %c2_45 = arith.constant 2 : index
    %c0_46 = arith.constant 0 : index
    %c0_47 = arith.constant 0 : index
    %59 = vector.load %arg17[%c2_45, %c0_46, %c0_47] : memref<4x8x8xf32, #tpu.memory_space<vmem>>, vector<1x8x8xf32>
    %60 = vector.shape_cast %59 : vector<1x8x8xf32> to vector<8x8xf32>
    %61 = vector.shape_cast %58 : vector<8x8xf32> to vector<1x8x8xf32>
    tpu.vector_store %arg17[%c2_45, %c0_46, %c0_47], %61 {strides = array<i32>} : memref<4x8x8xf32, #tpu.memory_space<vmem>>, vector<1x8x8xf32>,
    %c0_48 = arith.constant 0 : index
    %c80 = arith.constant 80 : index
    %62 = vector.load %arg15[%c0_48, %c80] : memref<8x96xf32, #tpu.memory_space<vmem>>, vector<8x8xf32>
    %c2_49 = arith.constant 2 : index
    %c0_50 = arith.constant 0 : index
    %c0_51 = arith.constant 0 : index
    %63 = vector.load %arg18[%c2_49, %c0_50, %c0_51] : memref<4x8x8xf32, #tpu.memory_space<vmem>>, vector<1x8x8xf32>
    %64 = vector.shape_cast %63 : vector<1x8x8xf32> to vector<8x8xf32>
    %65 = vector.shape_cast %62 : vector<8x8xf32> to vector<1x8x8xf32>
    tpu.vector_store %arg18[%c2_49, %c0_50, %c0_51], %65 {strides = array<i32>} : memref<4x8x8xf32, #tpu.memory_space<vmem>>, vector<1x8x8xf32>,
    %c0_52 = arith.constant 0 : index
    %c24 = arith.constant 24 : index
    %66 = vector.load %arg15[%c0_52, %c24] : memref<8x96xf32, #tpu.memory_space<vmem>>, vector<8x8xf32>
    %c3 = arith.constant 3 : index
    %c0_53 = arith.constant 0 : index
    %c0_54 = arith.constant 0 : index
    %67 = vector.load %arg16[%c3, %c0_53, %c0_54] : memref<4x8x8xf32, #tpu.memory_space<vmem>>, vector<1x8x8xf32>
    %68 = vector.shape_cast %67 : vector<1x8x8xf32> to vector<8x8xf32>
    %69 = vector.shape_cast %66 : vector<8x8xf32> to vector<1x8x8xf32>
    tpu.vector_store %arg16[%c3, %c0_53, %c0_54], %69 {strides = array<i32>} : memref<4x8x8xf32, #tpu.memory_space<vmem>>, vector<1x8x8xf32>,
    %c0_55 = arith.constant 0 : index
    %c56 = arith.constant 56 : index
    %70 = vector.load %arg15[%c0_55, %c56] : memref<8x96xf32, #tpu.memory_space<vmem>>, vector<8x8xf32>
    %c3_56 = arith.constant 3 : index
    %c0_57 = arith.constant 0 : index
    %c0_58 = arith.constant 0 : index
    %71 = vector.load %arg17[%c3_56, %c0_57, %c0_58] : memref<4x8x8xf32, #tpu.memory_space<vmem>>, vector<1x8x8xf32>
    %72 = vector.shape_cast %71 : vector<1x8x8xf32> to vector<8x8xf32>
    %73 = vector.shape_cast %70 : vector<8x8xf32> to vector<1x8x8xf32>
    tpu.vector_store %arg17[%c3_56, %c0_57, %c0_58], %73 {strides = array<i32>} : memref<4x8x8xf32, #tpu.memory_space<vmem>>, vector<1x8x8xf32>,
    %c0_59 = arith.constant 0 : index
    %c88 = arith.constant 88 : index
    %74 = vector.load %arg15[%c0_59, %c88] : memref<8x96xf32, #tpu.memory_space<vmem>>, vector<8x8xf32>
    %c3_60 = arith.constant 3 : index
    %c0_61 = arith.constant 0 : index
    %c0_62 = arith.constant 0 : index
    %75 = vector.load %arg18[%c3_60, %c0_61, %c0_62] : memref<4x8x8xf32, #tpu.memory_space<vmem>>, vector<1x8x8xf32>
    %76 = vector.shape_cast %75 : vector<1x8x8xf32> to vector<8x8xf32>
    %77 = vector.shape_cast %74 : vector<8x8xf32> to vector<1x8x8xf32>
    tpu.vector_store %arg18[%c3_60, %c0_61, %c0_62], %77 {strides = array<i32>} : memref<4x8x8xf32, #tpu.memory_space<vmem>>, vector<1x8x8xf32>,
    %78 = tpu.iota {dimensions = array<i32: 0>} : vector<8x8xi32>
    %79 = tpu.iota {dimensions = array<i32: 1>} : vector<8x8xi32>
    %80 = arith.cmpi sle, %79, %78 : vector<8x8xi32>
    %c0_i32 = arith.constant 0 : i32
    %c4_i32 = arith.constant 4 : i32
    %81 = arith.addi %c0_i32, %c4_i32 : i32
    %c1_i32 = arith.constant 1 : i32
    scf.for %arg21 = %c0_i32 to %81 step %c1_i32  : i32 {
      %150 = arith.index_cast %arg21 : i32 to index
      %c0_117 = arith.constant 0 : index
      %c0_118 = arith.constant 0 : index
      %151 = vector.load %arg16[%150, %c0_117, %c0_118] : memref<4x8x8xf32, #tpu.memory_space<vmem>>, vector<1x8x8xf32>
      %152 = vector.shape_cast %151 : vector<1x8x8xf32> to vector<8x8xf32>
      %153 = arith.index_cast %arg21 : i32 to index
      %c0_119 = arith.constant 0 : index
      %c0_120 = arith.constant 0 : index
      %154 = vector.load %arg17[%153, %c0_119, %c0_120] : memref<4x8x8xf32, #tpu.memory_space<vmem>>, vector<1x8x8xf32>
      %155 = vector.shape_cast %154 : vector<1x8x8xf32> to vector<8x8xf32>
      %156 = arith.index_cast %arg21 : i32 to index
      %c0_121 = arith.constant 0 : index
      %c0_122 = arith.constant 0 : index
      %157 = vector.load %arg18[%156, %c0_121, %c0_122] : memref<4x8x8xf32, #tpu.memory_space<vmem>>, vector<1x8x8xf32>
      %158 = vector.shape_cast %157 : vector<1x8x8xf32> to vector<8x8xf32>
      %cst_123 = arith.constant dense<0.000000e+00> : vector<8x8xf32>
      %159 = tpu.matmul %152, %155, %cst_123 {dimension_numbers = #tpu.dot_dimension_numbers<[1], [1], [0], [0], [0, 0, 1, 0], [], []>} : vector<8x8xf32>, vector<8x8xf32>, vector<8x8xf32> -> vector<8x8xf32>
      %cst_124 = arith.constant -1.000000e+30 : f32
      %160 = vector.broadcast %cst_124 : f32 to vector<8x8xf32>
      %161 = arith.select %80, %159, %160 : vector<8x8xi1>, vector<8x8xf32>
      %cst_125 = arith.constant dense<0xFF800000> : vector<8xf32>
      %162 = vector.multi_reduction <maximumf>, %161, %cst_125 [1] : vector<8x8xf32> to vector<8xf32>
      %163 = vector.shape_cast %162 : vector<8xf32> to vector<8x1xf32>
      %164 = vector.broadcast %163 : vector<8x1xf32> to vector<8x8xf32>
      %165 = arith.subf %161, %164 : vector<8x8xf32>
      %166 = math.exp %165 : vector<8x8xf32>
      %cst_126 = arith.constant dense<0.000000e+00> : vector<8xf32>
      %167 = vector.multi_reduction <add>, %166, %cst_126 [1] : vector<8x8xf32> to vector<8xf32>
      %168 = vector.shape_cast %167 : vector<8xf32> to vector<8x1xf32>
      %169 = tpu.reciprocal %168 {approx = true} : vector<8x1xf32> -> vector<8x1xf32>
      %170 = vector.broadcast %169 : vector<8x1xf32> to vector<8x8xf32>
      %171 = arith.mulf %166, %170 : vector<8x8xf32>
      %cst_127 = arith.constant dense<0.000000e+00> : vector<8x8xf32>
      %172 = tpu.matmul %171, %158, %cst_127 {dimension_numbers = #tpu.dot_dimension_numbers<[1], [0], [0], [1], [0, 0, 1, 1], [], []>} : vector<8x8xf32>, vector<8x8xf32>, vector<8x8xf32> -> vector<8x8xf32>
      %173 = arith.index_cast %arg21 : i32 to index
      %c0_128 = arith.constant 0 : index
      %c0_129 = arith.constant 0 : index
      %174 = vector.load %arg19[%173, %c0_128, %c0_129] : memref<4x8x8xf32, #tpu.memory_space<vmem>>, vector<1x8x8xf32>
      %175 = vector.shape_cast %174 : vector<1x8x8xf32> to vector<8x8xf32>
      %176 = vector.shape_cast %172 : vector<8x8xf32> to vector<1x8x8xf32>
      tpu.vector_store %arg19[%173, %c0_128, %c0_129], %176 {strides = array<i32>} : memref<4x8x8xf32, #tpu.memory_space<vmem>>, vector<1x8x8xf32>,
    }
    %c4_i32_63 = arith.constant 4 : i32
    %c0_64 = arith.constant 0 : index
    %c0_65 = arith.constant 0 : index
    %c0_66 = arith.constant 0 : index
    %82 = vector.load %arg19[%c0_64, %c0_65, %c0_66] : memref<4x8x8xf32, #tpu.memory_space<vmem>>, vector<1x8x8xf32>
    %83 = vector.shape_cast %82 : vector<1x8x8xf32> to vector<8x8xf32>
    %c0_67 = arith.constant 0 : index
    %c0_68 = arith.constant 0 : index
    %84 = vector.load %arg20[%c0_67, %c0_68] : memref<8x32xf32, #tpu.memory_space<vmem>>, vector<8x8xf32>
    tpu.vector_store %arg20[%c0_67, %c0_68], %83 {strides = array<i32>} : memref<8x32xf32, #tpu.memory_space<vmem>>, vector<8x8xf32>,
    %c1_69 = arith.constant 1 : index
    %c0_70 = arith.constant 0 : index
    %c0_71 = arith.constant 0 : index
    %85 = vector.load %arg19[%c1_69, %c0_70, %c0_71] : memref<4x8x8xf32, #tpu.memory_space<vmem>>, vector<1x8x8xf32>
    %86 = vector.shape_cast %85 : vector<1x8x8xf32> to vector<8x8xf32>
    %c0_72 = arith.constant 0 : index
    %c8_73 = arith.constant 8 : index
    %87 = vector.load %arg20[%c0_72, %c8_73] : memref<8x32xf32, #tpu.memory_space<vmem>>, vector<8x8xf32>
    tpu.vector_store %arg20[%c0_72, %c8_73], %86 {strides = array<i32>} : memref<8x32xf32, #tpu.memory_space<vmem>>, vector<8x8xf32>,
    %c2_74 = arith.constant 2 : index
    %c0_75 = arith.constant 0 : index
    %c0_76 = arith.constant 0 : index
    %88 = vector.load %arg19[%c2_74, %c0_75, %c0_76] : memref<4x8x8xf32, #tpu.memory_space<vmem>>, vector<1x8x8xf32>
    %89 = vector.shape_cast %88 : vector<1x8x8xf32> to vector<8x8xf32>
    %c0_77 = arith.constant 0 : index
    %c16_78 = arith.constant 16 : index
    %90 = vector.load %arg20[%c0_77, %c16_78] : memref<8x32xf32, #tpu.memory_space<vmem>>, vector<8x8xf32>
    tpu.vector_store %arg20[%c0_77, %c16_78], %89 {strides = array<i32>} : memref<8x32xf32, #tpu.memory_space<vmem>>, vector<8x8xf32>,
    %c3_79 = arith.constant 3 : index
    %c0_80 = arith.constant 0 : index
    %c0_81 = arith.constant 0 : index
    %91 = vector.load %arg19[%c3_79, %c0_80, %c0_81] : memref<4x8x8xf32, #tpu.memory_space<vmem>>, vector<1x8x8xf32>
    %92 = vector.shape_cast %91 : vector<1x8x8xf32> to vector<8x8xf32>
    %c0_82 = arith.constant 0 : index
    %c24_83 = arith.constant 24 : index
    %93 = vector.load %arg20[%c0_82, %c24_83] : memref<8x32xf32, #tpu.memory_space<vmem>>, vector<8x8xf32>
    tpu.vector_store %arg20[%c0_82, %c24_83], %92 {strides = array<i32>} : memref<8x32xf32, #tpu.memory_space<vmem>>, vector<8x8xf32>,
    %c0_84 = arith.constant 0 : index
    %c0_85 = arith.constant 0 : index
    %94 = vector.load %arg20[%c0_84, %c0_85] : memref<8x32xf32, #tpu.memory_space<vmem>>, vector<8x32xf32>
    %c0_86 = arith.constant 0 : index
    %c0_87 = arith.constant 0 : index
    %95 = vector.load %arg6[%c0_86, %c0_87] : memref<32x32xf32, #tpu.memory_space<vmem>>, vector<32x32xf32>
    %cst_88 = arith.constant dense<0.000000e+00> : vector<8x32xf32>
    %96 = tpu.matmul %94, %95, %cst_88 {dimension_numbers = #tpu.dot_dimension_numbers<[1], [0], [0], [1], [0, 0, 1, 1], [], []>} : vector<8x32xf32>, vector<32x32xf32>, vector<8x32xf32> -> vector<8x32xf32>
    %c0_89 = arith.constant 0 : index
    %c0_90 = arith.constant 0 : index
    %97 = vector.load %arg7[%c0_89, %c0_90] : memref<1x32xf32, #tpu.memory_space<vmem>>, vector<1x32xf32>
    %98 = vector.broadcast %97 : vector<1x32xf32> to vector<8x32xf32>
    %99 = arith.addf %96, %98 : vector<8x32xf32>
    %100 = arith.addf %1, %99 : vector<8x32xf32>
    %c0_91 = arith.constant 0 : index
    %c0_92 = arith.constant 0 : index
    %101 = vector.load %arg8[%c0_91, %c0_92] : memref<1x32xf32, #tpu.memory_space<vmem>>, vector<1x32xf32>
    %c0_93 = arith.constant 0 : index
    %c0_94 = arith.constant 0 : index
    %102 = vector.load %arg9[%c0_93, %c0_94] : memref<1x32xf32, #tpu.memory_space<vmem>>, vector<1x32xf32>
    %cst_95 = arith.constant dense<0.000000e+00> : vector<8xf32>
    %103 = vector.multi_reduction <add>, %100, %cst_95 [1] : vector<8x32xf32> to vector<8xf32>
    %104 = vector.shape_cast %103 : vector<8xf32> to vector<8x1xf32>
    %cst_96 = arith.constant 3.200000e+01 : f32
    %105 = vector.broadcast %cst_96 : f32 to vector<8x1xf32>
    %106 = arith.divf %104, %105 : vector<8x1xf32>
    %107 = vector.broadcast %106 : vector<8x1xf32> to vector<8x32xf32>
    %108 = arith.subf %100, %107 : vector<8x32xf32>
    %109 = arith.mulf %108, %108 : vector<8x32xf32>
    %cst_97 = arith.constant dense<0.000000e+00> : vector<8xf32>
    %110 = vector.multi_reduction <add>, %109, %cst_97 [1] : vector<8x32xf32> to vector<8xf32>
    %111 = vector.shape_cast %110 : vector<8xf32> to vector<8x1xf32>
    %cst_98 = arith.constant 3.200000e+01 : f32
    %112 = vector.broadcast %cst_98 : f32 to vector<8x1xf32>
    %113 = arith.divf %111, %112 : vector<8x1xf32>
    %cst_99 = arith.constant 9.99999974E-6 : f32
    %114 = vector.broadcast %cst_99 : f32 to vector<8x1xf32>
    %115 = arith.addf %113, %114 : vector<8x1xf32>
    %116 = math.rsqrt %115 : vector<8x1xf32>
    %117 = vector.broadcast %116 : vector<8x1xf32> to vector<8x32xf32>
    %118 = arith.mulf %108, %117 : vector<8x32xf32>
    %119 = vector.broadcast %101 : vector<1x32xf32> to vector<8x32xf32>
    %120 = arith.mulf %118, %119 : vector<8x32xf32>
    %121 = vector.broadcast %102 : vector<1x32xf32> to vector<8x32xf32>
    %122 = arith.addf %120, %121 : vector<8x32xf32>
    %c0_100 = arith.constant 0 : index
    %c0_101 = arith.constant 0 : index
    %123 = vector.load %arg10[%c0_100, %c0_101] : memref<32x128xf32, #tpu.memory_space<vmem>>, vector<32x128xf32>
    %cst_102 = arith.constant dense<0.000000e+00> : vector<8x128xf32>
    %124 = tpu.matmul %122, %123, %cst_102 {dimension_numbers = #tpu.dot_dimension_numbers<[1], [0], [0], [1], [0, 0, 1, 1], [], []>} : vector<8x32xf32>, vector<32x128xf32>, vector<8x128xf32> -> vector<8x128xf32>
    %c0_103 = arith.constant 0 : index
    %c0_104 = arith.constant 0 : index
    %125 = vector.load %arg11[%c0_103, %c0_104] : memref<1x128xf32, #tpu.memory_space<vmem>>, vector<1x128xf32>
    %126 = vector.broadcast %125 : vector<1x128xf32> to vector<8x128xf32>
    %127 = arith.addf %124, %126 : vector<8x128xf32>
    %cst_105 = arith.constant 5.000000e-01 : f32
    %128 = vector.broadcast %cst_105 : f32 to vector<8x128xf32>
    %129 = arith.mulf %128, %127 : vector<8x128xf32>
    %cst_106 = arith.constant 4.471500e-02 : f32
    %130 = vector.broadcast %cst_106 : f32 to vector<8x128xf32>
    %131 = arith.mulf %130, %127 : vector<8x128xf32>
    %132 = arith.mulf %131, %127 : vector<8x128xf32>
    %133 = arith.mulf %132, %127 : vector<8x128xf32>
    %134 = arith.addf %127, %133 : vector<8x128xf32>
    %cst_107 = arith.constant 0.797884583 : f32
    %135 = vector.broadcast %cst_107 : f32 to vector<8x128xf32>
    %136 = arith.mulf %135, %134 : vector<8x128xf32>
    %137 = math.tanh %136 : vector<8x128xf32>
    %cst_108 = arith.constant 1.000000e+00 : f32
    %138 = vector.broadcast %cst_108 : f32 to vector<8x128xf32>
    %139 = arith.addf %138, %137 : vector<8x128xf32>
    %140 = arith.mulf %129, %139 : vector<8x128xf32>
    %c0_109 = arith.constant 0 : index
    %c0_110 = arith.constant 0 : index
    %141 = vector.load %arg12[%c0_109, %c0_110] : memref<128x32xf32, #tpu.memory_space<vmem>>, vector<128x32xf32>
    %cst_111 = arith.constant dense<0.000000e+00> : vector<8x32xf32>
    %142 = tpu.matmul %140, %141, %cst_111 {dimension_numbers = #tpu.dot_dimension_numbers<[1], [0], [0], [1], [0, 0, 1, 1], [], []>} : vector<8x128xf32>, vector<128x32xf32>, vector<8x32xf32> -> vector<8x32xf32>
    %c0_112 = arith.constant 0 : index
    %c0_113 = arith.constant 0 : index
    %143 = vector.load %arg13[%c0_112, %c0_113] : memref<1x32xf32, #tpu.memory_space<vmem>>, vector<1x32xf32>
    %144 = vector.broadcast %143 : vector<1x32xf32> to vector<8x32xf32>
    %145 = arith.addf %142, %144 : vector<8x32xf32>
    %146 = arith.addf %100, %145 : vector<8x32xf32>
    %c0_114 = arith.constant 0 : index
    %c0_115 = arith.constant 0 : index
    %c0_116 = arith.constant 0 : index
    %147 = vector.load %arg14[%c0_114, %c0_115, %c0_116] : memref<1x8x32xf32, #tpu.memory_space<vmem>>, vector<1x8x32xf32>
    %148 = vector.shape_cast %147 : vector<1x8x32xf32> to vector<8x32xf32>
    %149 = vector.shape_cast %146 : vector<8x32xf32> to vector<1x8x32xf32>
    tpu.vector_store %arg14[%c0_114, %c0_115, %c0_116], %149 {strides = array<i32>} : memref<1x8x32xf32, #tpu.memory_space<vmem>>, vector<1x8x32xf32>,
    return
  }
  func.func @transform_0(%arg0: i32) -> (i32, i32, i32) {
    %c0_i32 = arith.constant 0 : i32
    %c0_i32_0 = arith.constant 0 : i32
    %c0_i32_1 = arith.constant 0 : i32
    return %arg0, %c0_i32, %c0_i32_0 : i32, i32, i32
  }
  func.func @transform_1(%arg0: i32) -> (i32, i32) {
    %c0_i32 = arith.constant 0 : i32
    %c0_i32_0 = arith.constant 0 : i32
    %c0_i32_1 = arith.constant 0 : i32
    return %c0_i32, %c0_i32_0 : i32, i32
  }
  func.func @transform_2(%arg0: i32) -> (i32, i32) {
    %c0_i32 = arith.constant 0 : i32
    %c0_i32_0 = arith.constant 0 : i32
    %c0_i32_1 = arith.constant 0 : i32
    return %c0_i32, %c0_i32_0 : i32, i32
  }
  func.func @transform_3(%arg0: i32) -> (i32, i32) {
    %c0_i32 = arith.constant 0 : i32
    %c0_i32_0 = arith.constant 0 : i32
    %c0_i32_1 = arith.constant 0 : i32
    return %c0_i32, %c0_i32_0 : i32, i32
  }
  func.func @transform_4(%arg0: i32) -> (i32, i32) {
    %c0_i32 = arith.constant 0 : i32
    %c0_i32_0 = arith.constant 0 : i32
    %c0_i32_1 = arith.constant 0 : i32
    return %c0_i32, %c0_i32_0 : i32, i32
  }
  func.func @transform_5(%arg0: i32) -> (i32, i32) {
    %c0_i32 = arith.constant 0 : i32
    %c0_i32_0 = arith.constant 0 : i32
    %c0_i32_1 = arith.constant 0 : i32
    return %c0_i32, %c0_i32_0 : i32, i32
  }
  func.func @transform_6(%arg0: i32) -> (i32, i32) {
    %c0_i32 = arith.constant 0 : i32
    %c0_i32_0 = arith.constant 0 : i32
    %c0_i32_1 = arith.constant 0 : i32
    return %c0_i32, %c0_i32_0 : i32, i32
  }
  func.func @transform_7(%arg0: i32) -> (i32, i32) {
    %c0_i32 = arith.constant 0 : i32
    %c0_i32_0 = arith.constant 0 : i32
    %c0_i32_1 = arith.constant 0 : i32
    return %c0_i32, %c0_i32_0 : i32, i32
  }
  func.func @transform_8(%arg0: i32) -> (i32, i32) {
    %c0_i32 = arith.constant 0 : i32
    %c0_i32_0 = arith.constant 0 : i32
    %c0_i32_1 = arith.constant 0 : i32
    return %c0_i32, %c0_i32_0 : i32, i32
  }
  func.func @transform_9(%arg0: i32) -> (i32, i32) {
    %c0_i32 = arith.constant 0 : i32
    %c0_i32_0 = arith.constant 0 : i32
    %c0_i32_1 = arith.constant 0 : i32
    return %c0_i32, %c0_i32_0 : i32, i32
  }
  func.func @transform_10(%arg0: i32) -> (i32, i32) {
    %c0_i32 = arith.constant 0 : i32
    %c0_i32_0 = arith.constant 0 : i32
    %c0_i32_1 = arith.constant 0 : i32
    return %c0_i32, %c0_i32_0 : i32, i32
  }
  func.func @transform_11(%arg0: i32) -> (i32, i32) {
    %c0_i32 = arith.constant 0 : i32
    %c0_i32_0 = arith.constant 0 : i32
    %c0_i32_1 = arith.constant 0 : i32
    return %c0_i32, %c0_i32_0 : i32, i32
  }
  func.func @transform_12(%arg0: i32) -> (i32, i32) {
    %c0_i32 = arith.constant 0 : i32
    %c0_i32_0 = arith.constant 0 : i32
    %c0_i32_1 = arith.constant 0 : i32
    return %c0_i32, %c0_i32_0 : i32, i32
  }
  func.func @transform_13(%arg0: i32) -> (i32, i32, i32) {
    %c0_i32 = arith.constant 0 : i32
    %c0_i32_0 = arith.constant 0 : i32
    %c0_i32_1 = arith.constant 0 : i32
    return %arg0, %c0_i32, %c0_i32_0 : i32, i32, i32
  }
}

module attributes {stable_mosaic.version = 11 : i64} {
  func.func @transformer_block_kernel(%arg0: i32, %arg1: memref<1x8x32xf32, #tpu.memory_space<vmem>>, %arg2: memref<1x32xf32, #tpu.memory_space<vmem>>, %arg3: memref<1x32xf32, #tpu.memory_space<vmem>>, %arg4: memref<32x96xf32, #tpu.memory_space<vmem>>, %arg5: memref<1x96xf32, #tpu.memory_space<vmem>>, %arg6: memref<32x32xf32, #tpu.memory_space<vmem>>, %arg7: memref<1x32xf32, #tpu.memory_space<vmem>>, %arg8: memref<1x32xf32, #tpu.memory_space<vmem>>, %arg9: memref<1x32xf32, #tpu.memory_space<vmem>>, %arg10: memref<32x128xf32, #tpu.memory_space<vmem>>, %arg11: memref<1x128xf32, #tpu.memory_space<vmem>>, %arg12: memref<128x32xf32, #tpu.memory_space<vmem>>, %arg13: memref<1x32xf32, #tpu.memory_space<vmem>>, %arg14: memref<1x8x32xf32, #tpu.memory_space<vmem>>, %arg15: memref<8x96xf32, #tpu.memory_space<vmem>>, %arg16: memref<4x8x8xf32, #tpu.memory_space<vmem>>, %arg17: memref<4x8x8xf32, #tpu.memory_space<vmem>>, %arg18: memref<4x8x8xf32, #tpu.memory_space<vmem>>, %arg19: memref<4x8x8xf32, #tpu.memory_space<vmem>>, %arg20: memref<8x32xf32, #tpu.memory_space<vmem>>) attributes {dimension_semantics = [#tpu.dimension_semantics<parallel>], iteration_bounds = array<i64: 2>, scalar_prefetch = 0 : i64, scratch_operands = 6 : i64, tpu.core_type = #tpu.core_type<tc>, window_params = [{transform_indices = @transform_0, window_bounds = array<i64: 1, 8, 32>}, {pipeline_mode = #tpu.pipeline_mode<synchronous>, transform_indices = @transform_1, window_bounds = array<i64: 1, 32>}, {pipeline_mode = #tpu.pipeline_mode<synchronous>, transform_indices = @transform_2, window_bounds = array<i64: 1, 32>}, {pipeline_mode = #tpu.pipeline_mode<synchronous>, transform_indices = @transform_3, window_bounds = array<i64: 32, 96>}, {pipeline_mode = #tpu.pipeline_mode<synchronous>, transform_indices = @transform_4, window_bounds = array<i64: 1, 96>}, {pipeline_mode = #tpu.pipeline_mode<synchronous>, transform_indices = @transform_5, window_bounds = array<i64: 32, 32>}, {pipeline_mode = #tpu.pipeline_mode<synchronous>, transform_indices = @transform_6, window_bounds = array<i64: 1, 32>}, {pipeline_mode = #tpu.pipeline_mode<synchronous>, transform_indices = @transform_7, window_bounds = array<i64: 1, 32>}, {pipeline_mode = #tpu.pipeline_mode<synchronous>, transform_indices = @transform_8, window_bounds = array<i64: 1, 32>}, {pipeline_mode = #tpu.pipeline_mode<synchronous>, transform_indices = @transform_9, window_bounds = array<i64: 32, 128>}, {pipeline_mode = #tpu.pipeline_mode<synchronous>, transform_indices = @transform_10, window_bounds = array<i64: 1, 128>}, {pipeline_mode = #tpu.pipeline_mode<synchronous>, transform_indices = @transform_11, window_bounds = array<i64: 128, 32>}, {pipeline_mode = #tpu.pipeline_mode<synchronous>, transform_indices = @transform_12, window_bounds = array<i64: 1, 32>}, {transform_indices = @transform_13, window_bounds = array<i64: 1, 8, 32>}]} {
    %c0 = arith.constant 0 : index
    %c0_0 = arith.constant 0 : index
    %c0_1 = arith.constant 0 : index
    %0 = vector.load %arg1[%c0, %c0_0, %c0_1] : memref<1x8x32xf32, #tpu.memory_space<vmem>>, vector<1x8x32xf32>
    %1 = vector.shape_cast %0 : vector<1x8x32xf32> to vector<8x32xf32>
    %c0_2 = arith.constant 0 : index
    %c0_3 = arith.constant 0 : index
    %2 = vector.load %arg2[%c0_2, %c0_3] : memref<1x32xf32, #tpu.memory_space<vmem>>, vector<1x32xf32>
    %c0_4 = arith.constant 0 : index
    %c0_5 = arith.constant 0 : index
    %3 = vector.load %arg3[%c0_4, %c0_5] : memref<1x32xf32, #tpu.memory_space<vmem>>, vector<1x32xf32>
    %cst = arith.constant dense<0.000000e+00> : vector<8xf32>
    %4 = vector.multi_reduction <add>, %1, %cst [1] : vector<8x32xf32> to vector<8xf32>
    %5 = vector.shape_cast %4 : vector<8xf32> to vector<8x1xf32>
    %cst_6 = arith.constant 3.200000e+01 : f32
    %6 = vector.broadcast %cst_6 : f32 to vector<8x1xf32>
    %7 = arith.divf %5, %6 : vector<8x1xf32>
    %8 = vector.broadcast %7 : vector<8x1xf32> to vector<8x32xf32>
    %9 = arith.subf %1, %8 : vector<8x32xf32>
    %10 = arith.mulf %9, %9 : vector<8x32xf32>
    %cst_7 = arith.constant dense<0.000000e+00> : vector<8xf32>
    %11 = vector.multi_reduction <add>, %10, %cst_7 [1] : vector<8x32xf32> to vector<8xf32>
    %12 = vector.shape_cast %11 : vector<8xf32> to vector<8x1xf32>
    %cst_8 = arith.constant 3.200000e+01 : f32
    %13 = vector.broadcast %cst_8 : f32 to vector<8x1xf32>
    %14 = arith.divf %12, %13 : vector<8x1xf32>
    %cst_9 = arith.constant 9.99999974E-6 : f32
    %15 = vector.broadcast %cst_9 : f32 to vector<8x1xf32>
    %16 = arith.addf %14, %15 : vector<8x1xf32>
    %17 = math.rsqrt %16 : vector<8x1xf32>
    %18 = vector.broadcast %17 : vector<8x1xf32> to vector<8x32xf32>
    %19 = arith.mulf %9, %18 : vector<8x32xf32>
    %20 = vector.broadcast %2 : vector<1x32xf32> to vector<8x32xf32>
    %21 = arith.mulf %19, %20 : vector<8x32xf32>
    %22 = vector.broadcast %3 : vector<1x32xf32> to vector<8x32xf32>
    %23 = arith.addf %21, %22 : vector<8x32xf32>
    %c0_10 = arith.constant 0 : index
    %c0_11 = arith.constant 0 : index
    %24 = vector.load %arg4[%c0_10, %c0_11] : memref<32x96xf32, #tpu.memory_space<vmem>>, vector<32x96xf32>
    %cst_12 = arith.constant dense<0.000000e+00> : vector<8x96xf32>
    %25 = tpu.matmul %23, %24, %cst_12 {dimension_numbers = #tpu.dot_dimension_numbers<[1], [0], [0], [1], [0, 0, 1, 1], [], []>} : vector<8x32xf32>, vector<32x96xf32>, vector<8x96xf32> -> vector<8x96xf32>
    %c0_13 = arith.constant 0 : index
    %c0_14 = arith.constant 0 : index
    %26 = vector.load %arg5[%c0_13, %c0_14] : memref<1x96xf32, #tpu.memory_space<vmem>>, vector<1x96xf32>
    %27 = vector.broadcast %26 : vector<1x96xf32> to vector<8x96xf32>
    %28 = arith.addf %25, %27 : vector<8x96xf32>
    %c0_15 = arith.constant 0 : index
    %c0_16 = arith.constant 0 : index
    %29 = vector.load %arg15[%c0_15, %c0_16] : memref<8x96xf32, #tpu.memory_space<vmem>>, vector<8x96xf32>
    tpu.vector_store %arg15[%c0_15, %c0_16], %28 {strides = array<i32>} : memref<8x96xf32, #tpu.memory_space<vmem>>, vector<8x96xf32>,
    %c0_17 = arith.constant 0 : index
    %c0_18 = arith.constant 0 : index
    %30 = vector.load %arg15[%c0_17, %c0_18] : memref<8x96xf32, #tpu.memory_space<vmem>>, vector<8x8xf32>
    %c0_19 = arith.constant 0 : index
    %c0_20 = arith.constant 0 : index
    %c0_21 = arith.constant 0 : index
    %31 = vector.load %arg16[%c0_19, %c0_20, %c0_21] : memref<4x8x8xf32, #tpu.memory_space<vmem>>, vector<1x8x8xf32>
    %32 = vector.shape_cast %31 : vector<1x8x8xf32> to vector<8x8xf32>
    %33 = vector.shape_cast %30 : vector<8x8xf32> to vector<1x8x8xf32>
    tpu.vector_store %arg16[%c0_19, %c0_20, %c0_21], %33 {strides = array<i32>} : memref<4x8x8xf32, #tpu.memory_space<vmem>>, vector<1x8x8xf32>,
    %c0_22 = arith.constant 0 : index
    %c32 = arith.constant 32 : index
    %34 = vector.load %arg15[%c0_22, %c32] : memref<8x96xf32, #tpu.memory_space<vmem>>, vector<8x8xf32>
    %c0_23 = arith.constant 0 : index
    %c0_24 = arith.constant 0 : index
    %c0_25 = arith.constant 0 : index
    %35 = vector.load %arg17[%c0_23, %c0_24, %c0_25] : memref<4x8x8xf32, #tpu.memory_space<vmem>>, vector<1x8x8xf32>
    %36 = vector.shape_cast %35 : vector<1x8x8xf32> to vector<8x8xf32>
    %37 = vector.shape_cast %34 : vector<8x8xf32> to vector<1x8x8xf32>
    tpu.vector_store %arg17[%c0_23, %c0_24, %c0_25], %37 {strides = array<i32>} : memref<4x8x8xf32, #tpu.memory_space<vmem>>, vector<1x8x8xf32>,
    %c0_26 = arith.constant 0 : index
    %c64 = arith.constant 64 : index
    %38 = vector.load %arg15[%c0_26, %c64] : memref<8x96xf32, #tpu.memory_space<vmem>>, vector<8x8xf32>
    %c0_27 = arith.constant 0 : index
    %c0_28 = arith.constant 0 : index
    %c0_29 = arith.constant 0 : index
    %39 = vector.load %arg18[%c0_27, %c0_28, %c0_29] : memref<4x8x8xf32, #tpu.memory_space<vmem>>, vector<1x8x8xf32>
    %40 = vector.shape_cast %39 : vector<1x8x8xf32> to vector<8x8xf32>
    %41 = vector.shape_cast %38 : vector<8x8xf32> to vector<1x8x8xf32>
    tpu.vector_store %arg18[%c0_27, %c0_28, %c0_29], %41 {strides = array<i32>} : memref<4x8x8xf32, #tpu.memory_space<vmem>>, vector<1x8x8xf32>,
    %c0_30 = arith.constant 0 : index
    %c8 = arith.constant 8 : index
    %42 = vector.load %arg15[%c0_30, %c8] : memref<8x96xf32, #tpu.memory_space<vmem>>, vector<8x8xf32>
    %c1 = arith.constant 1 : index
    %c0_31 = arith.constant 0 : index
    %c0_32 = arith.constant 0 : index
    %43 = vector.load %arg16[%c1, %c0_31, %c0_32] : memref<4x8x8xf32, #tpu.memory_space<vmem>>, vector<1x8x8xf32>
    %44 = vector.shape_cast %43 : vector<1x8x8xf32> to vector<8x8xf32>
    %45 = vector.shape_cast %42 : vector<8x8xf32> to vector<1x8x8xf32>
    tpu.vector_store %arg16[%c1, %c0_31, %c0_32], %45 {strides = array<i32>} : memref<4x8x8xf32, #tpu.memory_space<vmem>>, vector<1x8x8xf32>,
    %c0_33 = arith.constant 0 : index
    %c40 = arith.constant 40 : index
    %46 = vector.load %arg15[%c0_33, %c40] : memref<8x96xf32, #tpu.memory_space<vmem>>, vector<8x8xf32>
    %c1_34 = arith.constant 1 : index
    %c0_35 = arith.constant 0 : index
    %c0_36 = arith.constant 0 : index
    %47 = vector.load %arg17[%c1_34, %c0_35, %c0_36] : memref<4x8x8xf32, #tpu.memory_space<vmem>>, vector<1x8x8xf32>
    %48 = vector.shape_cast %47 : vector<1x8x8xf32> to vector<8x8xf32>
    %49 = vector.shape_cast %46 : vector<8x8xf32> to vector<1x8x8xf32>
    tpu.vector_store %arg17[%c1_34, %c0_35, %c0_36], %49 {strides = array<i32>} : memref<4x8x8xf32, #tpu.memory_space<vmem>>, vector<1x8x8xf32>,
    %c0_37 = arith.constant 0 : index
    %c72 = arith.constant 72 : index
    %50 = vector.load %arg15[%c0_37, %c72] : memref<8x96xf32, #tpu.memory_space<vmem>>, vector<8x8xf32>
    %c1_38 = arith.constant 1 : index
    %c0_39 = arith.constant 0 : index
    %c0_40 = arith.constant 0 : index
    %51 = vector.load %arg18[%c1_38, %c0_39, %c0_40] : memref<4x8x8xf32, #tpu.memory_space<vmem>>, vector<1x8x8xf32>
    %52 = vector.shape_cast %51 : vector<1x8x8xf32> to vector<8x8xf32>
    %53 = vector.shape_cast %50 : vector<8x8xf32> to vector<1x8x8xf32>
    tpu.vector_store %arg18[%c1_38, %c0_39, %c0_40], %53 {strides = array<i32>} : memref<4x8x8xf32, #tpu.memory_space<vmem>>, vector<1x8x8xf32>,
    %c0_41 = arith.constant 0 : index
    %c16 = arith.constant 16 : index
    %54 = vector.load %arg15[%c0_41, %c16] : memref<8x96xf32, #tpu.memory_space<vmem>>, vector<8x8xf32>
    %c2 = arith.constant 2 : index
    %c0_42 = arith.constant 0 : index
    %c0_43 = arith.constant 0 : index
    %55 = vector.load %arg16[%c2, %c0_42, %c0_43] : memref<4x8x8xf32, #tpu.memory_space<vmem>>, vector<1x8x8xf32>
    %56 = vector.shape_cast %55 : vector<1x8x8xf32> to vector<8x8xf32>
    %57 = vector.shape_cast %54 : vector<8x8xf32> to vector<1x8x8xf32>
    tpu.vector_store %arg16[%c2, %c0_42, %c0_43], %57 {strides = array<i32>} : memref<4x8x8xf32, #tpu.memory_space<vmem>>, vector<1x8x8xf32>,
    %c0_44 = arith.constant 0 : index
    %c48 = arith.constant 48 : index
    %58 = vector.load %arg15[%c0_44, %c48] : memref<8x96xf32, #tpu.memory_space<vmem>>, vector<8x8xf32>
    %c2_45 = arith.constant 2 : index
    %c0_46 = arith.constant 0 : index
    %c0_47 = arith.constant 0 : index
    %59 = vector.load %arg17[%c2_45, %c0_46, %c0_47] : memref<4x8x8xf32, #tpu.memory_space<vmem>>, vector<1x8x8xf32>
    %60 = vector.shape_cast %59 : vector<1x8x8xf32> to vector<8x8xf32>
    %61 = vector.shape_cast %58 : vector<8x8xf32> to vector<1x8x8xf32>
    tpu.vector_store %arg17[%c2_45, %c0_46, %c0_47], %61 {strides = array<i32>} : memref<4x8x8xf32, #tpu.memory_space<vmem>>, vector<1x8x8xf32>,
    %c0_48 = arith.constant 0 : index
    %c80 = arith.constant 80 : index
    %62 = vector.load %arg15[%c0_48, %c80] : memref<8x96xf32, #tpu.memory_space<vmem>>, vector<8x8xf32>
    %c2_49 = arith.constant 2 : index
    %c0_50 = arith.constant 0 : index
    %c0_51 = arith.constant 0 : index
    %63 = vector.load %arg18[%c2_49, %c0_50, %c0_51] : memref<4x8x8xf32, #tpu.memory_space<vmem>>, vector<1x8x8xf32>
    %64 = vector.shape_cast %63 : vector<1x8x8xf32> to vector<8x8xf32>
    %65 = vector.shape_cast %62 : vector<8x8xf32> to vector<1x8x8xf32>
    tpu.vector_store %arg18[%c2_49, %c0_50, %c0_51], %65 {strides = array<i32>} : memref<4x8x8xf32, #tpu.memory_space<vmem>>, vector<1x8x8xf32>,
    %c0_52 = arith.constant 0 : index
    %c24 = arith.constant 24 : index
    %66 = vector.load %arg15[%c0_52, %c24] : memref<8x96xf32, #tpu.memory_space<vmem>>, vector<8x8xf32>
    %c3 = arith.constant 3 : index
    %c0_53 = arith.constant 0 : index
    %c0_54 = arith.constant 0 : index
    %67 = vector.load %arg16[%c3, %c0_53, %c0_54] : memref<4x8x8xf32, #tpu.memory_space<vmem>>, vector<1x8x8xf32>
    %68 = vector.shape_cast %67 : vector<1x8x8xf32> to vector<8x8xf32>
    %69 = vector.shape_cast %66 : vector<8x8xf32> to vector<1x8x8xf32>
    tpu.vector_store %arg16[%c3, %c0_53, %c0_54], %69 {strides = array<i32>} : memref<4x8x8xf32, #tpu.memory_space<vmem>>, vector<1x8x8xf32>,
    %c0_55 = arith.constant 0 : index
    %c56 = arith.constant 56 : index
    %70 = vector.load %arg15[%c0_55, %c56] : memref<8x96xf32, #tpu.memory_space<vmem>>, vector<8x8xf32>
    %c3_56 = arith.constant 3 : index
    %c0_57 = arith.constant 0 : index
    %c0_58 = arith.constant 0 : index
    %71 = vector.load %arg17[%c3_56, %c0_57, %c0_58] : memref<4x8x8xf32, #tpu.memory_space<vmem>>, vector<1x8x8xf32>
    %72 = vector.shape_cast %71 : vector<1x8x8xf32> to vector<8x8xf32>
    %73 = vector.shape_cast %70 : vector<8x8xf32> to vector<1x8x8xf32>
    tpu.vector_store %arg17[%c3_56, %c0_57, %c0_58], %73 {strides = array<i32>} : memref<4x8x8xf32, #tpu.memory_space<vmem>>, vector<1x8x8xf32>,
    %c0_59 = arith.constant 0 : index
    %c88 = arith.constant 88 : index
    %74 = vector.load %arg15[%c0_59, %c88] : memref<8x96xf32, #tpu.memory_space<vmem>>, vector<8x8xf32>
    %c3_60 = arith.constant 3 : index
    %c0_61 = arith.constant 0 : index
    %c0_62 = arith.constant 0 : index
    %75 = vector.load %arg18[%c3_60, %c0_61, %c0_62] : memref<4x8x8xf32, #tpu.memory_space<vmem>>, vector<1x8x8xf32>
    %76 = vector.shape_cast %75 : vector<1x8x8xf32> to vector<8x8xf32>
    %77 = vector.shape_cast %74 : vector<8x8xf32> to vector<1x8x8xf32>
    tpu.vector_store %arg18[%c3_60, %c0_61, %c0_62], %77 {strides = array<i32>} : memref<4x8x8xf32, #tpu.memory_space<vmem>>, vector<1x8x8xf32>,
    %78 = tpu.iota {dimensions = array<i32: 0>} : vector<8x8xi32>
    %79 = tpu.iota {dimensions = array<i32: 1>} : vector<8x8xi32>
    %80 = arith.cmpi sle, %79, %78 : vector<8x8xi32>
    %c0_i32 = arith.constant 0 : i32
    %c4_i32 = arith.constant 4 : i32
    %81 = arith.addi %c0_i32, %c4_i32 : i32
    %c1_i32 = arith.constant 1 : i32
    scf.for %arg21 = %c0_i32 to %81 step %c1_i32  : i32 {
      %150 = arith.index_cast %arg21 : i32 to index
      %c0_117 = arith.constant 0 : index
      %c0_118 = arith.constant 0 : index
      %151 = vector.load %arg16[%150, %c0_117, %c0_118] : memref<4x8x8xf32, #tpu.memory_space<vmem>>, vector<1x8x8xf32>
      %152 = vector.shape_cast %151 : vector<1x8x8xf32> to vector<8x8xf32>
      %153 = arith.index_cast %arg21 : i32 to index
      %c0_119 = arith.constant 0 : index
      %c0_120 = arith.constant 0 : index
      %154 = vector.load %arg17[%153, %c0_119, %c0_120] : memref<4x8x8xf32, #tpu.memory_space<vmem>>, vector<1x8x8xf32>
      %155 = vector.shape_cast %154 : vector<1x8x8xf32> to vector<8x8xf32>
      %156 = arith.index_cast %arg21 : i32 to index
      %c0_121 = arith.constant 0 : index
      %c0_122 = arith.constant 0 : index
      %157 = vector.load %arg18[%156, %c0_121, %c0_122] : memref<4x8x8xf32, #tpu.memory_space<vmem>>, vector<1x8x8xf32>
      %158 = vector.shape_cast %157 : vector<1x8x8xf32> to vector<8x8xf32>
      %cst_123 = arith.constant dense<0.000000e+00> : vector<8x8xf32>
      %159 = tpu.matmul %152, %155, %cst_123 {dimension_numbers = #tpu.dot_dimension_numbers<[1], [1], [0], [0], [0, 0, 1, 0], [], []>} : vector<8x8xf32>, vector<8x8xf32>, vector<8x8xf32> -> vector<8x8xf32>
      %cst_124 = arith.constant -1.000000e+30 : f32
      %160 = vector.broadcast %cst_124 : f32 to vector<8x8xf32>
      %161 = arith.select %80, %159, %160 : vector<8x8xi1>, vector<8x8xf32>
      %cst_125 = arith.constant dense<0xFF800000> : vector<8xf32>
      %162 = vector.multi_reduction <maximumf>, %161, %cst_125 [1] : vector<8x8xf32> to vector<8xf32>
      %163 = vector.shape_cast %162 : vector<8xf32> to vector<8x1xf32>
      %164 = vector.broadcast %163 : vector<8x1xf32> to vector<8x8xf32>
      %165 = arith.subf %161, %164 : vector<8x8xf32>
      %166 = math.exp %165 : vector<8x8xf32>
      %cst_126 = arith.constant dense<0.000000e+00> : vector<8xf32>
      %167 = vector.multi_reduction <add>, %166, %cst_126 [1] : vector<8x8xf32> to vector<8xf32>
      %168 = vector.shape_cast %167 : vector<8xf32> to vector<8x1xf32>
      %169 = tpu.reciprocal %168 {approx = true} : vector<8x1xf32> -> vector<8x1xf32>
      %170 = vector.broadcast %169 : vector<8x1xf32> to vector<8x8xf32>
      %171 = arith.mulf %166, %170 : vector<8x8xf32>
      %cst_127 = arith.constant dense<0.000000e+00> : vector<8x8xf32>
      %172 = tpu.matmul %171, %158, %cst_127 {dimension_numbers = #tpu.dot_dimension_numbers<[1], [0], [0], [1], [0, 0, 1, 1], [], []>} : vector<8x8xf32>, vector<8x8xf32>, vector<8x8xf32> -> vector<8x8xf32>
      %173 = arith.index_cast %arg21 : i32 to index
      %c0_128 = arith.constant 0 : index
      %c0_129 = arith.constant 0 : index
      %174 = vector.load %arg19[%173, %c0_128, %c0_129] : memref<4x8x8xf32, #tpu.memory_space<vmem>>, vector<1x8x8xf32>
      %175 = vector.shape_cast %174 : vector<1x8x8xf32> to vector<8x8xf32>
      %176 = vector.shape_cast %172 : vector<8x8xf32> to vector<1x8x8xf32>
      tpu.vector_store %arg19[%173, %c0_128, %c0_129], %176 {strides = array<i32>} : memref<4x8x8xf32, #tpu.memory_space<vmem>>, vector<1x8x8xf32>,
    }
    %c4_i32_63 = arith.constant 4 : i32
    %c0_64 = arith.constant 0 : index
    %c0_65 = arith.constant 0 : index
    %c0_66 = arith.constant 0 : index
    %82 = vector.load %arg19[%c0_64, %c0_65, %c0_66] : memref<4x8x8xf32, #tpu.memory_space<vmem>>, vector<1x8x8xf32>
    %83 = vector.shape_cast %82 : vector<1x8x8xf32> to vector<8x8xf32>
    %c0_67 = arith.constant 0 : index
    %c0_68 = arith.constant 0 : index
    %84 = vector.load %arg20[%c0_67, %c0_68] : memref<8x32xf32, #tpu.memory_space<vmem>>, vector<8x8xf32>
    tpu.vector_store %arg20[%c0_67, %c0_68], %83 {strides = array<i32>} : memref<8x32xf32, #tpu.memory_space<vmem>>, vector<8x8xf32>,
    %c1_69 = arith.constant 1 : index
    %c0_70 = arith.constant 0 : index
    %c0_71 = arith.constant 0 : index
    %85 = vector.load %arg19[%c1_69, %c0_70, %c0_71] : memref<4x8x8xf32, #tpu.memory_space<vmem>>, vector<1x8x8xf32>
    %86 = vector.shape_cast %85 : vector<1x8x8xf32> to vector<8x8xf32>
    %c0_72 = arith.constant 0 : index
    %c8_73 = arith.constant 8 : index
    %87 = vector.load %arg20[%c0_72, %c8_73] : memref<8x32xf32, #tpu.memory_space<vmem>>, vector<8x8xf32>
    tpu.vector_store %arg20[%c0_72, %c8_73], %86 {strides = array<i32>} : memref<8x32xf32, #tpu.memory_space<vmem>>, vector<8x8xf32>,
    %c2_74 = arith.constant 2 : index
    %c0_75 = arith.constant 0 : index
    %c0_76 = arith.constant 0 : index
    %88 = vector.load %arg19[%c2_74, %c0_75, %c0_76] : memref<4x8x8xf32, #tpu.memory_space<vmem>>, vector<1x8x8xf32>
    %89 = vector.shape_cast %88 : vector<1x8x8xf32> to vector<8x8xf32>
    %c0_77 = arith.constant 0 : index
    %c16_78 = arith.constant 16 : index
    %90 = vector.load %arg20[%c0_77, %c16_78] : memref<8x32xf32, #tpu.memory_space<vmem>>, vector<8x8xf32>
    tpu.vector_store %arg20[%c0_77, %c16_78], %89 {strides = array<i32>} : memref<8x32xf32, #tpu.memory_space<vmem>>, vector<8x8xf32>,
    %c3_79 = arith.constant 3 : index
    %c0_80 = arith.constant 0 : index
    %c0_81 = arith.constant 0 : index
    %91 = vector.load %arg19[%c3_79, %c0_80, %c0_81] : memref<4x8x8xf32, #tpu.memory_space<vmem>>, vector<1x8x8xf32>
    %92 = vector.shape_cast %91 : vector<1x8x8xf32> to vector<8x8xf32>
    %c0_82 = arith.constant 0 : index
    %c24_83 = arith.constant 24 : index
    %93 = vector.load %arg20[%c0_82, %c24_83] : memref<8x32xf32, #tpu.memory_space<vmem>>, vector<8x8xf32>
    tpu.vector_store %arg20[%c0_82, %c24_83], %92 {strides = array<i32>} : memref<8x32xf32, #tpu.memory_space<vmem>>, vector<8x8xf32>,
    %c0_84 = arith.constant 0 : index
    %c0_85 = arith.constant 0 : index
    %94 = vector.load %arg20[%c0_84, %c0_85] : memref<8x32xf32, #tpu.memory_space<vmem>>, vector<8x32xf32>
    %c0_86 = arith.constant 0 : index
    %c0_87 = arith.constant 0 : index
    %95 = vector.load %arg6[%c0_86, %c0_87] : memref<32x32xf32, #tpu.memory_space<vmem>>, vector<32x32xf32>
    %cst_88 = arith.constant dense<0.000000e+00> : vector<8x32xf32>
    %96 = tpu.matmul %94, %95, %cst_88 {dimension_numbers = #tpu.dot_dimension_numbers<[1], [0], [0], [1], [0, 0, 1, 1], [], []>} : vector<8x32xf32>, vector<32x32xf32>, vector<8x32xf32> -> vector<8x32xf32>
    %c0_89 = arith.constant 0 : index
    %c0_90 = arith.constant 0 : index
    %97 = vector.load %arg7[%c0_89, %c0_90] : memref<1x32xf32, #tpu.memory_space<vmem>>, vector<1x32xf32>
    %98 = vector.broadcast %97 : vector<1x32xf32> to vector<8x32xf32>
    %99 = arith.addf %96, %98 : vector<8x32xf32>
    %100 = arith.addf %1, %99 : vector<8x32xf32>
    %c0_91 = arith.constant 0 : index
    %c0_92 = arith.constant 0 : index
    %101 = vector.load %arg8[%c0_91, %c0_92] : memref<1x32xf32, #tpu.memory_space<vmem>>, vector<1x32xf32>
    %c0_93 = arith.constant 0 : index
    %c0_94 = arith.constant 0 : index
    %102 = vector.load %arg9[%c0_93, %c0_94] : memref<1x32xf32, #tpu.memory_space<vmem>>, vector<1x32xf32>
    %cst_95 = arith.constant dense<0.000000e+00> : vector<8xf32>
    %103 = vector.multi_reduction <add>, %100, %cst_95 [1] : vector<8x32xf32> to vector<8xf32>
    %104 = vector.shape_cast %103 : vector<8xf32> to vector<8x1xf32>
    %cst_96 = arith.constant 3.200000e+01 : f32
    %105 = vector.broadcast %cst_96 : f32 to vector<8x1xf32>
    %106 = arith.divf %104, %105 : vector<8x1xf32>
    %107 = vector.broadcast %106 : vector<8x1xf32> to vector<8x32xf32>
    %108 = arith.subf %100, %107 : vector<8x32xf32>
    %109 = arith.mulf %108, %108 : vector<8x32xf32>
    %cst_97 = arith.constant dense<0.000000e+00> : vector<8xf32>
    %110 = vector.multi_reduction <add>, %109, %cst_97 [1] : vector<8x32xf32> to vector<8xf32>
    %111 = vector.shape_cast %110 : vector<8xf32> to vector<8x1xf32>
    %cst_98 = arith.constant 3.200000e+01 : f32
    %112 = vector.broadcast %cst_98 : f32 to vector<8x1xf32>
    %113 = arith.divf %111, %112 : vector<8x1xf32>
    %cst_99 = arith.constant 9.99999974E-6 : f32
    %114 = vector.broadcast %cst_99 : f32 to vector<8x1xf32>
    %115 = arith.addf %113, %114 : vector<8x1xf32>
    %116 = math.rsqrt %115 : vector<8x1xf32>
    %117 = vector.broadcast %116 : vector<8x1xf32> to vector<8x32xf32>
    %118 = arith.mulf %108, %117 : vector<8x32xf32>
    %119 = vector.broadcast %101 : vector<1x32xf32> to vector<8x32xf32>
    %120 = arith.mulf %118, %119 : vector<8x32xf32>
    %121 = vector.broadcast %102 : vector<1x32xf32> to vector<8x32xf32>
    %122 = arith.addf %120, %121 : vector<8x32xf32>
    %c0_100 = arith.constant 0 : index
    %c0_101 = arith.constant 0 : index
    %123 = vector.load %arg10[%c0_100, %c0_101] : memref<32x128xf32, #tpu.memory_space<vmem>>, vector<32x128xf32>
    %cst_102 = arith.constant dense<0.000000e+00> : vector<8x128xf32>
    %124 = tpu.matmul %122, %123, %cst_102 {dimension_numbers = #tpu.dot_dimension_numbers<[1], [0], [0], [1], [0, 0, 1, 1], [], []>} : vector<8x32xf32>, vector<32x128xf32>, vector<8x128xf32> -> vector<8x128xf32>
    %c0_103 = arith.constant 0 : index
    %c0_104 = arith.constant 0 : index
    %125 = vector.load %arg11[%c0_103, %c0_104] : memref<1x128xf32, #tpu.memory_space<vmem>>, vector<1x128xf32>
    %126 = vector.broadcast %125 : vector<1x128xf32> to vector<8x128xf32>
    %127 = arith.addf %124, %126 : vector<8x128xf32>
    %cst_105 = arith.constant 5.000000e-01 : f32
    %128 = vector.broadcast %cst_105 : f32 to vector<8x128xf32>
    %129 = arith.mulf %128, %127 : vector<8x128xf32>
    %cst_106 = arith.constant 4.471500e-02 : f32
    %130 = vector.broadcast %cst_106 : f32 to vector<8x128xf32>
    %131 = arith.mulf %130, %127 : vector<8x128xf32>
    %132 = arith.mulf %131, %127 : vector<8x128xf32>
    %133 = arith.mulf %132, %127 : vector<8x128xf32>
    %134 = arith.addf %127, %133 : vector<8x128xf32>
    %cst_107 = arith.constant 0.797884583 : f32
    %135 = vector.broadcast %cst_107 : f32 to vector<8x128xf32>
    %136 = arith.mulf %135, %134 : vector<8x128xf32>
    %137 = math.tanh %136 : vector<8x128xf32>
    %cst_108 = arith.constant 1.000000e+00 : f32
    %138 = vector.broadcast %cst_108 : f32 to vector<8x128xf32>
    %139 = arith.addf %138, %137 : vector<8x128xf32>
    %140 = arith.mulf %129, %139 : vector<8x128xf32>
    %c0_109 = arith.constant 0 : index
    %c0_110 = arith.constant 0 : index
    %141 = vector.load %arg12[%c0_109, %c0_110] : memref<128x32xf32, #tpu.memory_space<vmem>>, vector<128x32xf32>
    %cst_111 = arith.constant dense<0.000000e+00> : vector<8x32xf32>
    %142 = tpu.matmul %140, %141, %cst_111 {dimension_numbers = #tpu.dot_dimension_numbers<[1], [0], [0], [1], [0, 0, 1, 1], [], []>} : vector<8x128xf32>, vector<128x32xf32>, vector<8x32xf32> -> vector<8x32xf32>
    %c0_112 = arith.constant 0 : index
    %c0_113 = arith.constant 0 : index
    %143 = vector.load %arg13[%c0_112, %c0_113] : memref<1x32xf32, #tpu.memory_space<vmem>>, vector<1x32xf32>
    %144 = vector.broadcast %143 : vector<1x32xf32> to vector<8x32xf32>
    %145 = arith.addf %142, %144 : vector<8x32xf32>
    %146 = arith.addf %100, %145 : vector<8x32xf32>
    %c0_114 = arith.constant 0 : index
    %c0_115 = arith.constant 0 : index
    %c0_116 = arith.constant 0 : index
    %147 = vector.load %arg14[%c0_114, %c0_115, %c0_116] : memref<1x8x32xf32, #tpu.memory_space<vmem>>, vector<1x8x32xf32>
    %148 = vector.shape_cast %147 : vector<1x8x32xf32> to vector<8x32xf32>
    %149 = vector.shape_cast %146 : vector<8x32xf32> to vector<1x8x32xf32>
    tpu.vector_store %arg14[%c0_114, %c0_115, %c0_116], %149 {strides = array<i32>} : memref<1x8x32xf32, #tpu.memory_space<vmem>>, vector<1x8x32xf32>,
    return
  }
  func.func @transform_0(%arg0: i32) -> (i32, i32, i32) {
    %c0_i32 = arith.constant 0 : i32
    %c0_i32_0 = arith.constant 0 : i32
    %c0_i32_1 = arith.constant 0 : i32
    return %arg0, %c0_i32, %c0_i32_0 : i32, i32, i32
  }
  func.func @transform_1(%arg0: i32) -> (i32, i32) {
    %c0_i32 = arith.constant 0 : i32
    %c0_i32_0 = arith.constant 0 : i32
    %c0_i32_1 = arith.constant 0 : i32
    return %c0_i32, %c0_i32_0 : i32, i32
  }
  func.func @transform_2(%arg0: i32) -> (i32, i32) {
    %c0_i32 = arith.constant 0 : i32
    %c0_i32_0 = arith.constant 0 : i32
    %c0_i32_1 = arith.constant 0 : i32
    return %c0_i32, %c0_i32_0 : i32, i32
  }
  func.func @transform_3(%arg0: i32) -> (i32, i32) {
    %c0_i32 = arith.constant 0 : i32
    %c0_i32_0 = arith.constant 0 : i32
    %c0_i32_1 = arith.constant 0 : i32
    return %c0_i32, %c0_i32_0 : i32, i32
  }
  func.func @transform_4(%arg0: i32) -> (i32, i32) {
    %c0_i32 = arith.constant 0 : i32
    %c0_i32_0 = arith.constant 0 : i32
    %c0_i32_1 = arith.constant 0 : i32
    return %c0_i32, %c0_i32_0 : i32, i32
  }
  func.func @transform_5(%arg0: i32) -> (i32, i32) {
    %c0_i32 = arith.constant 0 : i32
    %c0_i32_0 = arith.constant 0 : i32
    %c0_i32_1 = arith.constant 0 : i32
    return %c0_i32, %c0_i32_0 : i32, i32
  }
  func.func @transform_6(%arg0: i32) -> (i32, i32) {
    %c0_i32 = arith.constant 0 : i32
    %c0_i32_0 = arith.constant 0 : i32
    %c0_i32_1 = arith.constant 0 : i32
    return %c0_i32, %c0_i32_0 : i32, i32
  }
  func.func @transform_7(%arg0: i32) -> (i32, i32) {
    %c0_i32 = arith.constant 0 : i32
    %c0_i32_0 = arith.constant 0 : i32
    %c0_i32_1 = arith.constant 0 : i32
    return %c0_i32, %c0_i32_0 : i32, i32
  }
  func.func @transform_8(%arg0: i32) -> (i32, i32) {
    %c0_i32 = arith.constant 0 : i32
    %c0_i32_0 = arith.constant 0 : i32
    %c0_i32_1 = arith.constant 0 : i32
    return %c0_i32, %c0_i32_0 : i32, i32
  }
  func.func @transform_9(%arg0: i32) -> (i32, i32) {
    %c0_i32 = arith.constant 0 : i32
    %c0_i32_0 = arith.constant 0 : i32
    %c0_i32_1 = arith.constant 0 : i32
    return %c0_i32, %c0_i32_0 : i32, i32
  }
  func.func @transform_10(%arg0: i32) -> (i32, i32) {
    %c0_i32 = arith.constant 0 : i32
    %c0_i32_0 = arith.constant 0 : i32
    %c0_i32_1 = arith.constant 0 : i32
    return %c0_i32, %c0_i32_0 : i32, i32
  }
  func.func @transform_11(%arg0: i32) -> (i32, i32) {
    %c0_i32 = arith.constant 0 : i32
    %c0_i32_0 = arith.constant 0 : i32
    %c0_i32_1 = arith.constant 0 : i32
    return %c0_i32, %c0_i32_0 : i32, i32
  }
  func.func @transform_12(%arg0: i32) -> (i32, i32) {
    %c0_i32 = arith.constant 0 : i32
    %c0_i32_0 = arith.constant 0 : i32
    %c0_i32_1 = arith.constant 0 : i32
    return %c0_i32, %c0_i32_0 : i32, i32
  }
  func.func @transform_13(%arg0: i32) -> (i32, i32, i32) {
    %c0_i32 = arith.constant 0 : i32
    %c0_i32_0 = arith.constant 0 : i32
    %c0_i32_1 = arith.constant 0 : i32
    return %arg0, %c0_i32, %c0_i32_0 : i32, i32, i32
  }
}

</mosaic_0001>

<bundles_post_ra>
// kernel: tpu_custom_call.1
= control target key start
LH: loop header
LB: loop body
LE: loop exit
PB: predicated region body
PF: predicated region fallthrough
CT: control target
= control target key end

     0   :  { %s1949_s0 = inlined_call_operand.vmem [shape: f32[2,8,32], index: 0, kind: input, shape index: {}]   ;;  %s1950_s1 = inlined_call_operand.vmem [shape: f32[1,32], index: 1, kind: input, shape index: {}]   ;;  %s1951_s2 = inlined_call_operand.vmem [shape: f32[1,32], index: 2, kind: input, shape index: {}]   ;;  %s1952_s3 = inlined_call_operand.vmem [shape: f32[32,96], index: 3, kind: input, shape index: {}]   ;;  %s1953_s4 = inlined_call_operand.vmem [shape: f32[1,96], index: 4, kind: input, shape index: {}]   ;;  %s1954_s5 = inlined_call_operand.vmem [shape: f32[32,32], index: 5, kind: input, shape index: {}]   ;;  %s1955_s6 = inlined_call_operand.vmem [shape: f32[1,32], index: 6, kind: input, shape index: {}]   ;;  %s1956_s7 = inlined_call_operand.vmem [shape: f32[1,32], index: 7, kind: input, shape index: {}]   ;;  %s1957_s8 = inlined_call_operand.vmem [shape: f32[1,32], index: 8, kind: input, shape index: {}]   ;;  %s1958_s9 = inlined_call_operand.vmem [shape: f32[32,128], index: 9, kind: input, shape index: {}]   ;;  %s1959_s10 = inlined_call_operand.vmem [shape: f32[1,128], index: 10, kind: input, shape index: {}]   ;;  %s1960_s11 = inlined_call_operand.vmem [shape: f32[128,32], index: 11, kind: input, shape index: {}]   ;;  %s1961_s12 = inlined_call_operand.vmem [shape: f32[1,32], index: 12, kind: input, shape index: {}]   ;;  %s1962_s13 = inlined_call_operand.hbm [shape: f32[2,8,32], index: 13, kind: output, shape index: {}]  }
   0x1   :  { %1964 = sst [smem:[#allocation12_spill]] %s1949_s0 }
   0x2   :  { %1965 = sst [smem:[#allocation13_spill]] %s1950_s1 }
   0x3   :  { %18 = vsyncpa [#allocation9], 0 }
   0x4   :  { %20 = vsyncpa [#allocation9 + $0x1], 0  ;;  %s1647_s25 = smov 0   ;;  %s1649_s26 = smov 0  }
   0x5   :  { %s1651_s27 = smov 0   ;;  %s1653_s28 = smov 0  }
   0x6 LB: > { %s1668_s29 = sadd.s32 4294967295, %s1551_s28   ;;  %s1228_s30 = sadd.s32 4294967294, %s1551_s28   ;;  %s1551_s28 = sphi %s1653_s28, %s1978_s28   ;;  %s1547_s27 = sphi %s1651_s27, %s1977_s27   ;;  %s1543_s26 = sphi %s1649_s26, %s1976_s26   ;;  %s1539_s25 = sphi %s1647_s25, %s1975_s25  }
   0x7   : > { %s1672_s14 = sadd.s32 1, %s1551_s28   ;;  %s311_s15 = sadd.s32 1, %s1547_s27 }
   0x8   : > { %s308_s16 = ssub.s32 %s1551_s28, %s1672_s14  ;;  %p321_p0 = scmp.ne.s32.totalorder %s1547_s27, %s1543_s26 }
   0x9   : > { %p309_p1 = scmp.eq.s32.totalorder %s308_s16, 0  ;;  %p322_p2 = scmp.eq.s32.totalorder %s1668_s29, 1 }
   0xa   : > { %p327_p3 = scmp.ne.s32.totalorder %s1543_s26, %s1539_s25  ;;  %p328_p4 = scmp.eq.s32.totalorder %s1228_s30, 1 }
   0xb   : > { %s1683_s17 = scalar_select %p309_p1, %s1547_s27, %s311_s15  }
   0xc   : > { %p1685_p5 = por %p322_p2, %p321_p0  ;;  %p1689_p6 = por %p328_p4, %p327_p3 }
   0xd   : > { %1966 = sst [smem:[#allocation11_spill]] %s1683_s17  ;;  %p1231_p7 = scmp.ge.s32.totalorder %s1551_s28, 1 }
   0xe   : > { %p389_p8 = scmp.lt.s32.totalorder %s1551_s28, 3 }
  0x10   : > { %p390_p9 = pnand %p1231_p7, %p389_p8 }
  0x11   : > { %p432_p10 = scmp.lt.s32.totalorder (!%p390_p9), %s1668_s29, 1  ;;  %vm439_vm0 = vcmask (!%p390_p9), 261120   ;;  %s1969_s0 = sld [smem:[#allocation12_spill]] (!%p390_p9)  ;;  %v468_v7 = vld [vmem:[%s1952_s3] sm:$0xff] (!%p390_p9)  ;;  %v469_v8 = vld [vmem:[%s1952_s3 + $0x8] sm:$0xff] (!%p390_p9)  ;;  %v470_v9 = vld [vmem:[%s1952_s3 + $0x10] sm:$0xff] (!%p390_p9)  ;;  %v632_v29 = vlaneseq (!%p390_p9) }
  0x12   : > { %393 = sbr.rel (%p390_p9) target bundleno = 2592 (0xa20), region = 72  ;;  %s1963_s30 = sand.u32 (!%p390_p9), 1, %s1543_s26   ;;  %v1557_v10 = vmov (!%p390_p9), 0.0|0.0   ;;  %v1368_v11 = vpack.c.bf16 (!%p390_p9), %v469_v8, %v468_v7  ;;  %v471_v12 = vld [vmem:[%s1952_s3 + $0x18] sm:$0xff] (!%p390_p9)  ;;  %vm1558_vm1 = vmmov (!%p390_p9), 0   ;;  %v1559_v13 = vmov (!%p390_p9), 0.0  }
  0x13   : > { %1367 = vmatprep.subr.bf16.mxu0 (!%p390_p9), %v1557_v10  ;;  %1297 = vmatprep.mubr.msk.f32.mxu0 (!%p390_p9), %vm1558_vm1, %v1559_v13  ;;  %v1371_v14 = vpack.c.bf16 (!%p390_p9), %v471_v12, %v470_v9  ;;  %s1970_s1 = sld [smem:[#allocation13_spill]] (!%p390_p9)  ;;  %v1235_v21 = vld [vmem:[%s1951_s2] ss:$0 sm:$0xff] (!%p390_p9)  ;;  %vm552_vm2 = vcmask (!%p390_p9), 785408   ;;  %vm555_vm3 = vcmask (!%p390_p9), 64512   ;;  %s1560_s22 = smov (!%p390_p9), 120  }
  0x14   : > { %1369 = vmatpush3.bf16.msra.mxu0 (!%p390_p9), %v1368_v11  ;;  %v1236_v24 = vld [vmem:[%s1953_s4] ss:$0 sm:$0xff] (!%p390_p9)  ;;  %s1561_s23 = smov (!%p390_p9), 96   ;;  %s1562_s15 = smov (!%p390_p9), 72   ;;  %v1738_v30 = vshrl.u32 (!%p390_p9), %v632_v29, 7  ;;  %v1740_v31 = vand.u32 (!%p390_p9), 127, %v632_v29 }
  0x15   : > { %1370 = vmatprep.subr.bf16.mxu0 (!%p390_p9), %v1557_v10  ;;  %s1563_s16 = smov (!%p390_p9), 64   ;;  %s1565_s17 = smov (!%p390_p9), 56  }
  0x16   : > { %vm636_vm4 = vcmp.le.s32.totalorder (!%p390_p9), %v1740_v31, %v1738_v30 }
  0x18   : > { %1372 = vmatpush3.bf16.msra.mxu0 (!%p390_p9), %v1371_v14 }
  0x19   : > { %s433_s20 = scalar_select %p432_p10, %s1668_s29, 1  ;;  %v1234_v19 = vld [vmem:[%s1970_s1] ss:$0 sm:$0xff] }
  0x1b   : > { %s1233_s21 = sshll.u32 %s433_s20, 3  ;;  %s1566_s20 = smov 112  }
  0x1c   : > { %s435_s24 = scalar_lea.vmem %s1969_s0, %s1233_s21  ;;  %s1564_s0 = smov 88  }
  0x1d   : > { %v1700_v0 = vld [vmem:[%s435_s24] sm:$0xff]  ;;  %s1718_s24 = sshll.u32 %s1963_s30, 3  ;;  %s1567_s21 = smov 80  }
  0x1e   : > { %v440_v1 = vsel %vm439_vm0, %v1700_v0, 0.0 }
  0x1f   : > { %441 = vadd.xlane.f32.xlu0 %v440_v1 }
  0xac   : > { %v442_v2 = vpop.xlane.xlu0 %441 }
  0xad   : > { %v444_v3 = vmul.f32 0.03125, %v442_v2 }
  0xaf   : > { %v445_v4 = vsub.f32 %v1700_v0, %v444_v3 }
  0xb1   : > { %v446_v5 = vmul.f32 %v445_v4, %v445_v4 }
  0xb3   : > { %v447_v6 = vsel %vm439_vm0, %v446_v5, 0.0 }
  0xb4   : > { %448 = vadd.xlane.f32.xlu0 %v447_v6 }
 0x141   : > { %v449_v15 = vpop.xlane.xlu0 %448 }
 0x142   : > { %v450_v16 = vmul.f32 0.03125, %v449_v15 }
 0x144   : > { %v451_v17 = vadd.f32 1e-05, %v450_v16 }
 0x146   : > { %1475 = vrsqrt.f32 %v451_v17 }
 0x150   : > { %v1476_v18 = vpop.eup %1475 }
 0x151   : > { %v453_v20 = vmul.f32 %v1476_v18, %v445_v4 }
 0x153   : > { %v460_v22 = vmul.f32 %v1234_v19, %v453_v20 }
 0x155   : > { %v467_v23 = vadd.f32 %v1235_v21, %v460_v22 }
 0x157   : > { %1298 = vmatmul.mubr.msk.f32.vlgmr.msra.gmra.mrb[0].mxu0 %vm439_vm0, %v467_v23 }
 0x22a   : > { %v548_v25 = vpop.f32.mrb[0].mxu0 }
 0x22b   : > { %v549_v26 = vadd.f32 %v1236_v24, %v548_v25  ;;  %v1299_v27 = vpop.f32.mrb[1].mxu0 }
 0x22d   : > { %553 = vst.msk [vmem:[#allocation2] sm:$0xff] %vm552_vm2, %v549_v26 }
 0x234   : > { %v554_v28 = vld [vmem:[#allocation2] sm:$0xff] }
 0x235   : > { %556 = vst.msk [vmem:[#allocation3] sm:$0xff] %vm555_vm3, %v554_v28  ;;  %571 = vrot.lane.b32.xlu0 %v554_v28, %s1560_s22  ;;  %559 = vrot.lane.b32.xlu1 %v554_v28, %s1561_s23  ;;  %s1568_s22 = smov 48   ;;  %s1569_s23 = smov 104  }
 0x239   : > { %620 = vrot.lane.b32.xlu0 %v554_v28, %s1562_s15  ;;  %565 = vrot.lane.b32.xlu1 %v554_v28, %s1563_s16  ;;  %s1570_s15 = smov 40  }
 0x23d   : > { %578 = vrot.lane.b32.xlu1 %v554_v28, %s1564_s0  ;;  %s1756_s0 = smov 0  }
 0x241   : > { %585 = vrot.lane.b32.xlu1 %v554_v28, %s1565_s17 }
 0x245   : > { %592 = vrot.lane.b32.xlu1 %v554_v28, %s1566_s20 }
 0x249   : > { %599 = vrot.lane.b32.xlu1 %v554_v28, %s1567_s21 }
 0x24d   : > { %606 = vrot.lane.b32.xlu1 %v554_v28, %s1568_s22 }
 0x251   : > { %613 = vrot.lane.b32.xlu1 %v554_v28, %s1569_s23 }
 0x255   : > { %627 = vrot.lane.b32.xlu1 %v554_v28, %s1570_s15 }
 0x2a7   : > { %v572_v32 = vpop.permute.xlu0 %571  ;;  %v560_v33 = vpop.permute.xlu1 %559 }
 0x2a8   : > { %575 = vst.msk [vmem:[#allocation3 + $0x8] sm:$0xff] %vm555_vm3, %v572_v32  ;;  %562 = vst.msk [vmem:[#allocation4] sm:$0xff] %vm555_vm3, %v560_v33 }
 0x2ab   : > { %v621_v34 = vpop.permute.xlu0 %620  ;;  %v566_v35 = vpop.permute.xlu1 %565 }
 0x2ac   : > { %624 = vst.msk [vmem:[#allocation4 + $0x18] sm:$0xff] %vm555_vm3, %v621_v34  ;;  %568 = vst.msk [vmem:[#allocation5] sm:$0xff] %vm555_vm3, %v566_v35 }
 0x2af   : > { %v579_v36 = vpop.permute.xlu1 %578 }
 0x2b0   : > { %582 = vst.msk [vmem:[#allocation4 + $0x8] sm:$0xff] %vm555_vm3, %v579_v36 }
 0x2b3   : > { %v586_v37 = vpop.permute.xlu1 %585 }
 0x2b4   : > { %589 = vst.msk [vmem:[#allocation5 + $0x8] sm:$0xff] %vm555_vm3, %v586_v37 }
 0x2b7   : > { %v593_v38 = vpop.permute.xlu1 %592 }
 0x2b8   : > { %596 = vst.msk [vmem:[#allocation3 + $0x10] sm:$0xff] %vm555_vm3, %v593_v38 }
 0x2bb   : > { %v600_v39 = vpop.permute.xlu1 %599 }
 0x2bc   : > { %603 = vst.msk [vmem:[#allocation4 + $0x10] sm:$0xff] %vm555_vm3, %v600_v39 }
 0x2bf   : > { %v607_v40 = vpop.permute.xlu1 %606 }
 0x2c0   : > { %610 = vst.msk [vmem:[#allocation5 + $0x10] sm:$0xff] %vm555_vm3, %v607_v40 }
 0x2c3   : > { %v614_v41 = vpop.permute.xlu1 %613 }
 0x2c4   : > { %617 = vst.msk [vmem:[#allocation3 + $0x18] sm:$0xff] %vm555_vm3, %v614_v41 }
 0x2c7   : > { %v628_v42 = vpop.permute.xlu1 %627 }
 0x2c8   : > { %631 = vst.msk [vmem:[#allocation5 + $0x18] sm:$0xff] %vm555_vm3, %v628_v42 }
 0x2c9 LB: >> { %v1571_v43 = vmov 0.0   ;;  %vm1572_vm5 = vmmov 0   ;;  %s1762_s17 = sshll.u32 %s1555_s0, 3  ;;  %s642_s0 = sadd.s32 1, %s1555_s0   ;;  %s1555_s0 = sphi %s1756_s0, %s642_s0  }
 0x2ca   : >> { %1300 = vmatprep.subr.mxu0 %v1571_v43  ;;  %1302 = vmatprep.mubr.msk.f32.mxu0 %vm1572_vm5, %v1571_v43  ;;  %s646_s20 = scalar_lea.vmem [#allocation4], %s1762_s17  ;;  %s644_s21 = scalar_lea.vmem [#allocation3], %s1762_s17 }
 0x2cb   : >> { %1305 = vmatprep.subr.mxu1 %v1571_v43  ;;  %1307 = vmatprep.mubr.msk.f32.mxu1 %vm1572_vm5, %v1571_v43  ;;  %v647_v44 = vld [vmem:[%s646_s20] sm:$0xff]  ;;  %s648_s22 = scalar_lea.vmem [#allocation5], %s1762_s17  ;;  %s811_s23 = scalar_lea.vmem [#allocation6], %s1762_s17 }
 0x2cc   : >> { %1301 = vmatpush3.xpose.msk.msra.mxu0 %vm555_vm3, %v647_v44  ;;  %v645_v45 = vld [vmem:[%s644_s21] sm:$0xff]  ;;  %p639_p11 = scmp.ge.s32.totalorder %s642_s0, 4  }
 0x2cd   : > { %s1573_s15 = smov (%p639_p11), 8   ;;  %v840_v1 = vld [vmem:[%s1954_s5] sm:$0xff] (%p639_p11)  ;;  %v841_v2 = vld [vmem:[%s1954_s5 + $0x8] sm:$0xff] (%p639_p11)  ;;  %1385 = vmatprep.subr.bf16.mxu0 (%p639_p11), %v1557_v10  ;;  %s1574_s0 = smov (%p639_p11), 24   ;;  %v842_v5 = vld [vmem:[%s1954_s5 + $0x10] sm:$0xff] (%p639_p11)  ;;  %vm821_vm6 = vcmask (%p639_p11), 130112  }
 0x2ce   : > { %v1374_v4 = vpack.c.bf16 (%p639_p11), %v841_v2, %v840_v1  ;;  %v843_v6 = vld [vmem:[%s1954_s5 + $0x18] sm:$0xff] (%p639_p11)  ;;  %s1575_s17 = smov (%p639_p11), 16   ;;  %vm829_vm7 = vcmask (%p639_p11), 195712   ;;  %vm837_vm8 = vcmask (%p639_p11), 261312   ;;  %v1242_v14 = vld [vmem:[%s1955_s6] ss:$0 sm:$0xff] (%p639_p11) }
 0x2cf   : >> { %1303 = vmatmul.mubr.msk.f32.vlgmr.msra.gmra.mrb[0].mxu0 %vm555_vm3, %v645_v45  ;;  %v649_v55 = vld [vmem:[%s648_s22] sm:$0xff]  ;;  %v1377_v7 = vpack.c.bf16 (%p639_p11), %v843_v6, %v842_v5  ;;  %v956_v25 = vld [vmem:[%s1958_s9 + $0x10] sm:$0xff] (%p639_p11)  ;;  %v957_v27 = vld [vmem:[%s1958_s9 + $0x18] sm:$0xff] (%p639_p11) }
 0x2d0   : >> { %1306 = vmatpush3.msra.mxu1 %v649_v55  ;;  %1364 = vmatprep.mubr.msk.f32.mxu0 (%p639_p11), %vm1558_vm1, %v1559_v13  ;;  %v954_v24 = vld [vmem:[%s1958_s9] sm:$0xff] (%p639_p11)  ;;  %v1383_v28 = vpack.c.bf16 (%p639_p11), %v957_v27, %v956_v25  ;;  %v1048_v30 = vld [vmem:[%s1960_s11 + $0x8] sm:$0xff] (%p639_p11)  ;;  %v1049_v41 = vld [vmem:[%s1960_s11 + $0x10] sm:$0xff] (%p639_p11) }
 0x2d1   : > { %1373 = vmatprep.subr.bf16.mxu1 (%p639_p11), %v1557_v10  ;;  %v1047_v29 = vld [vmem:[%s1960_s11] sm:$0xff] (%p639_p11)  ;;  %v1050_v42 = vld [vmem:[%s1960_s11 + $0x18] sm:$0xff] (%p639_p11)  ;;  %v1052_v45 = vld [vmem:[%s1960_s11 + $0x28] sm:$0xff] (%p639_p11) }
 0x2d2   : > { %v1386_v31 = vpack.c.bf16 (%p639_p11), %v1048_v30, %v1047_v29  ;;  %v1244_v36 = vld [vmem:[%s1956_s7] ss:$0 sm:$0xff] (%p639_p11)  ;;  %v1389_v43 = vpack.c.bf16 (%p639_p11), %v1050_v42, %v1049_v41 }
 0x2d3   : > { %v1245_v38 = vld [vmem:[%s1957_s8] ss:$0 sm:$0xff] (%p639_p11) }
 0x2d4   : > { %1387 = vmatpush3.bf16.msra.mxu0 (%p639_p11), %v1386_v31  ;;  %v1051_v44 = vld [vmem:[%s1960_s11 + $0x20] sm:$0xff] (%p639_p11) }
 0x2d5   : > { %1388 = vmatprep.subr.bf16.mxu0 (%p639_p11), %v1557_v10 }
 0x2d8   : > { %1390 = vmatpush3.bf16.msra.mxu0 (%p639_p11), %v1389_v43 }
 0x2d9   : > { %1391 = vmatprep.subr.bf16.mxu0 (%p639_p11), %v1557_v10 }
 0x3a2   : >> { %v722_v46 = vpop.f32.mrb[0].mxu0 }
 0x3a3   : >> { %v726_v47 = vsel %vm636_vm4, %v722_v46, -1e+30  ;;  %v1304_v48 = vpop.f32.mrb[1].mxu0  ;;  %v1392_v46 = vpack.c.bf16 (%p639_p11), %v1052_v45, %v1051_v44 }
 0x3a4   : >> { %v727_v49 = vsel %vm555_vm3, %v726_v47, -inf  ;;  %v1054_v48 = vld [vmem:[%s1960_s11 + $0x38] sm:$0xff] (%p639_p11) }
 0x3a5   : >> { %728 = vmax.xlane.f32.xlu0 %v727_v49  ;;  %1393 = vmatpush3.bf16.msra.mxu0 (%p639_p11), %v1392_v46 }
 0x3a6   : > { %1394 = vmatprep.subr.bf16.mxu0 (%p639_p11), %v1557_v10 }
 0x432   : >> { %v729_v50 = vpop.xlane.xlu0 %728 }
 0x433   : >> { %v730_v51 = vsub.f32 %v726_v47, %v729_v50  ;;  %v1053_v47 = vld [vmem:[%s1960_s11 + $0x30] sm:$0xff] (%p639_p11)  ;;  %v1055_v50 = vld [vmem:[%s1960_s11 + $0x40] sm:$0xff] (%p639_p11) }
 0x434   : > { %v1395_v49 = vpack.c.bf16 (%p639_p11), %v1054_v48, %v1053_v47 }
 0x435   : >> { %v731_v52 = vmul.f32 1.442695, %v730_v51  ;;  %v1056_v51 = vld [vmem:[%s1960_s11 + $0x48] sm:$0xff] (%p639_p11) }
 0x436   : > { %1396 = vmatpush3.bf16.msra.mxu0 (%p639_p11), %v1395_v49 }
 0x437   : >> { %1477 = vpow2.f32 %v731_v52  ;;  %v1398_v52 = vpack.c.bf16 (%p639_p11), %v1056_v51, %v1055_v50  ;;  %1397 = vmatprep.subr.bf16.mxu0 (%p639_p11), %v1557_v10 }
 0x43a   : > { %1399 = vmatpush3.bf16.msra.mxu0 (%p639_p11), %v1398_v52 }
 0x43b   : > { %1400 = vmatprep.subr.bf16.mxu0 (%p639_p11), %v1557_v10 }
 0x441   : >> { %v1478_v53 = vpop.eup %1477 }
 0x442   : >> { %v733_v54 = vsel %vm555_vm3, %v1478_v53, 0.0 }
 0x443   : >> { %734 = vadd.xlane.f32.xlu0 %v733_v54  ;;  %v1058_v54 = vld [vmem:[%s1960_s11 + $0x58] sm:$0xff] (%p639_p11) }
 0x4d0   : >> { %v735_v56 = vpop.xlane.xlu0 %734 }
 0x4d1   : >> { %1479 = vrcp.f32 %v735_v56  ;;  %v1059_v56 = vld [vmem:[%s1960_s11 + $0x60] sm:$0xff] (%p639_p11) }
 0x4db   : >> { %v1480_v57 = vpop.eup %1479 }
 0x4dc   : >> { %v737_v58 = vmul.f32 %v1480_v57, %v1478_v53  ;;  %v1057_v53 = vld [vmem:[%s1960_s11 + $0x50] sm:$0xff] (%p639_p11)  ;;  %v1060_v57 = vld [vmem:[%s1960_s11 + $0x68] sm:$0xff] (%p639_p11) }
 0x4dd   : > { %v1401_v55 = vpack.c.bf16 (%p639_p11), %v1058_v54, %v1057_v53 }
 0x4de   : >> { %1308 = vmatmul.mubr.msk.f32.vlgmr.msra.gmra.mrb[0].mxu1 %vm555_vm3, %v737_v58  ;;  %v1404_v58 = vpack.c.bf16 (%p639_p11), %v1060_v57, %v1059_v56 }
 0x4df   : > { %1318 = vmatprep.mubr.msk.f32.mxu1 (%p639_p11), %vm1558_vm1, %v1559_v13  ;;  %1375 = vmatpush3.bf16.msra.mxu1 (%p639_p11), %v1374_v4 }
 0x4e0   : > { %1376 = vmatprep.subr.bf16.mxu1 (%p639_p11), %v1557_v10  ;;  %1402 = vmatpush3.bf16.msra.mxu0 (%p639_p11), %v1401_v55 }
 0x4e1   : > { %1403 = vmatprep.subr.bf16.mxu0 (%p639_p11), %v1557_v10 }
 0x4e3   : > { %1378 = vmatpush3.bf16.msra.mxu1 (%p639_p11), %v1377_v7 }
 0x4e4   : > { %1379 = vmatprep.subr.bf16.mxu1 (%p639_p11), %v1557_v10  ;;  %1405 = vmatpush3.bf16.msra.mxu0 (%p639_p11), %v1404_v58 }
 0x4e5   : > { %1406 = vmatprep.subr.bf16.mxu0 (%p639_p11), %v1557_v10 }
 0x5ac   : > { %641 = sbr.rel (!%p639_p11) target bundleno = 713 (0x2c9), region = 130 }
 0x5b1   : >> { %v807_v59 = vpop.f32.mrb[0].mxu1 }
 0x5b2   : >> { %812 = vst.msk [vmem:[%s811_s23] sm:$0xff] %vm555_vm3, %v807_v59  ;;  %v1309_v60 = vpop.f32.mrb[1].mxu1  ;;  %v1061_v59 = vld [vmem:[%s1960_s11 + $0x70] sm:$0xff] (%p639_p11)  ;;  %s1971_s23 = scalar_lea.vmem (%p639_p11), [#allocation8], %s1718_s24 }
 0x5b3   : > { %v1062_v60 = vld [vmem:[%s1960_s11 + $0x78] sm:$0xff]  ;;  %s1972_s20 = smov %s1971_s23 }
 0x5b9   : > { %v816_v61 = vld [vmem:[#allocation6 + $0x8] sm:$0xff]  ;;  %v832_v62 = vld [vmem:[#allocation6 + $0x18] sm:$0xff]  ;;  %v813_v63 = vld [vmem:[#allocation6] sm:$0xff] }
 0x5ba   : > { %818 = vrot.lane.b32.xlu0 %v816_v61, %s1573_s15  ;;  %v824_v3 = vld [vmem:[#allocation6 + $0x10] sm:$0xff]  ;;  %834 = vrot.lane.b32.xlu1 %v832_v62, %s1574_s0  ;;  %814 = vst.msk [vmem:[#allocation7] sm:$0xff] %vm555_vm3, %v813_v63  ;;  %v1407_v61 = vpack.c.bf16 %v1062_v60, %v1061_v59  ;;  %v1246_v62 = vld [vmem:[%s1959_s10] ss:$0 sm:$0xff]  ;;  %s1250_s0 = sshll.u32 %s1668_s29, 7  ;;  %s1156_s15 = sshll.u32 %s1971_s23, 4  ;;  %s1904_s15 = int_to_ptr.vmem [resolvable:$true] %s1156_s15 }
 0x5bb   : > { %s1902_s16 = scalar_lea.hbm %s1962_s13, %s1250_s0  ;;  %s1973_s29 = sand.u32 1, %s1543_s26  }
 0x5bc   : > { %1408 = vmatpush3.bf16.msra.mxu0 %v1407_v61  ;;  %s1143_s21 = scalar_lea.sflag [#allocation9], %s1973_s29  ;;  %s1485_s22 = scalar_lea.vmem %s1904_s15, 128 }
 0x5bd   : > { %p1486_p12 = scmp.ne.s32.totalorder %s1904_s15, %s1485_s22  ;;  %s1576_s23 = smov [#allocation8]  }
 0x5be   : > { %826 = vrot.lane.b32.xlu0 %v824_v3, %s1575_s17  ;;  %s1489_s1 = sshll.u32 %s1576_s23, 4  ;;  %s1490_s1 = int_to_ptr.vmem [resolvable:$false] %s1489_s1 }
 0x5bf   : > { %p1487_p13 = pnand %p1486_p12, %p1685_p5  ;;  %s1491_s0 = scalar_lea.vmem %s1490_s1, 256 }
 0x5c0   : > { %p1492_p1 = scmp.lt.s32.totalorder %s1904_s15, %s1490_s1  ;;  %p1493_p2 = scmp.lt.s32.totalorder %s1491_s0, %s1485_s22 }
 0x5c1   : > { %p1488_p0 = pneg %p1487_p13 }
 0x5c2   : > { %p1494_p3 = por %p1493_p2, %p1492_p1 }
 0x5c4   : > { %p1495_p4 = pnand %p1494_p3, %p1488_p0 }
 0x62c   : > { %v819_v8 = vpop.permute.xlu0 %818  ;;  %v835_v9 = vpop.permute.xlu1 %834 }
 0x62d   : > { %822 = vst.msk [vmem:[#allocation7] sm:$0xff] %vm821_vm6, %v819_v8 }
 0x630   : > { %v827_v11 = vpop.permute.xlu0 %826 }
 0x631   : > { %830 = vst.msk [vmem:[#allocation7] sm:$0xff] %vm829_vm7, %v827_v11 }
 0x632   : > { %838 = vst.msk [vmem:[#allocation7] sm:$0xff] %vm837_vm8, %v835_v9 }
 0x639   : > { %v839_v12 = vld [vmem:[#allocation7] sm:$0xff] }
 0x63a   : > { %1319 = vmatmul.mubr.msk.f32.vlgmr.msra.gmra.mrb[0].mxu1 %vm439_vm0, %v839_v12  ;;  %v1248_v12 = vld [vmem:[%s1961_s12] ss:$0 sm:$0xff] }
 0x63b   : > { %1329 = vmatprep.mubr.msk.f32.mxu1 %vm1558_vm1, %v1559_v13 }
 0x70d   : > { %v920_v15 = vpop.f32.mrb[0].mxu1 }
 0x70e   : > { %v921_v16 = vadd.f32 %v1242_v14, %v920_v15  ;;  %v1320_v17 = vpop.f32.mrb[1].mxu1 }
 0x710   : > { %v1808_v18 = vadd.f32 %v921_v16, %v1700_v0  ;;  %v955_v0 = vld [vmem:[%s1958_s9 + $0x8] sm:$0xff] }
 0x711   : > { %v1380_v26 = vpack.c.bf16 %v955_v0, %v954_v24 }
 0x712   : > { %v927_v19 = vsel %vm439_vm0, %v1808_v18, 0.0 }
 0x713   : > { %928 = vadd.xlane.f32.xlu1 %v927_v19  ;;  %1381 = vmatpush3.bf16.msra.mxu1 %v1380_v26 }
 0x714   : > { %1382 = vmatprep.subr.bf16.mxu1 %v1557_v10 }
 0x717   : > { %1384 = vmatpush3.bf16.msra.mxu1 %v1383_v28 }
 0x7a0   : > { %v929_v20 = vpop.xlane.xlu1 %928 }
 0x7a1   : > { %v930_v21 = vmul.f32 0.03125, %v929_v20 }
 0x7a3   : > { %v931_v22 = vsub.f32 %v1808_v18, %v930_v21 }
 0x7a5   : > { %v932_v23 = vmul.f32 %v931_v22, %v931_v22 }
 0x7a7   : > { %v933_v13 = vsel %vm439_vm0, %v932_v23, 0.0 }
 0x7a8   : > { %934 = vadd.xlane.f32.xlu0 %v933_v13 }
 0x835   : > { %v935_v32 = vpop.xlane.xlu0 %934 }
 0x836   : > { %v936_v33 = vmul.f32 0.03125, %v935_v32 }
 0x838   : > { %v937_v34 = vadd.f32 1e-05, %v936_v33 }
 0x83a   : > { %1481 = vrsqrt.f32 %v937_v34 }
 0x844   : > { %v1482_v35 = vpop.eup %1481 }
 0x845   : > { %v939_v37 = vmul.f32 %v1482_v35, %v931_v22 }
 0x847   : > { %v946_v39 = vmul.f32 %v1244_v36, %v939_v37 }
 0x849   : > { %v953_v40 = vadd.f32 %v1245_v38, %v946_v39 }
 0x84b   : > { %1330 = vmatmul.mubr.msk.f32.vlgmr.msra.gmra.mrb[2].mxu1 %vm439_vm0, %v953_v40 }
 0x91e   : > { %v1034_v63 = vpop.f32.mrb[2].mxu1 }
 0x91f   : > { %v1035_v1 = vadd.f32 %v1246_v62, %v1034_v63  ;;  %v1331_v2 = vpop.f32.mrb[3].mxu1 }
 0x921   : > { %v1039_v3 = vmul.f32 0.044715, %v1035_v1  ;;  %v1038_v10 = vmul.f32 0.5, %v1035_v1 }
 0x923   : > { %v1040_v4 = vmul.f32 %v1039_v3, %v1035_v1 }
 0x925   : > { %v1041_v5 = vmul.f32 %v1040_v4, %v1035_v1 }
 0x927   : > { %v1042_v6 = vadd.f32 %v1041_v5, %v1035_v1 }
 0x929   : > { %v1043_v7 = vmul.f32 0.7978846, %v1042_v6 }
 0x92b   : > { %1483 = vtanh.f32 %v1043_v7 }
 0x935   : > { %v1484_v8 = vpop.eup %1483 }
 0x936   : > { %v1045_v9 = vadd.f32 1.0, %v1484_v8 }
 0x938   : > { %v1046_v11 = vmul.f32 %v1045_v9, %v1038_v10 }
 0x93a   : > { %1365 = vmatmul.mubr.f32.vlgmr.msra.gmra.mrb[0].mxu0 %v1046_v11 }
 0xa0d   : > { %v1136_v14 = vpop.f32.mrb[0].mxu0 }
 0xa0e   : > { %v1137_v15 = vadd.f32 %v1248_v12, %v1136_v14  ;;  %v1366_v16 = vpop.f32.mrb[1].mxu0 }
 0xa10   : > { %v1140_v17 = vadd.f32 %v1137_v15, %v1808_v18 }
 0xa12   : > { %1141 = vst.msk [vmem:[%s1972_s20] sm:$0xff] %vm439_vm0, %v1140_v17 }
 0xa13   : > { %1498 = shalt.err (!%p1495_p4)
}
 0xa14   : > { %s1499_s24 = scalar_lea.hbm %s1902_s16, 128  ;;  %s1503_s20 = scalar_lea.hbm %s1962_s13, 256 }
 0xa15   : > { %p1500_p7 = scmp.ne.s32.totalorder %s1902_s16, %s1499_s24  ;;  %p1504_p10 = scmp.lt.u32.totalorder %s1902_s16, %s1962_s13 }
 0xa16   : > { %p1505_p11 = scmp.lt.u32.totalorder %s1503_s20, %s1499_s24  ;;  %p1507_p13 = scmp.lt.u32.totalorder %s1499_s24, %s1902_s16 }
 0xa17   : > { %p1501_p8 = pnand %p1500_p7, %p1685_p5 }
 0xa18   : > { %p1506_p12 = por %p1505_p11, %p1504_p10 }
 0xa19   : > { %p1502_p9 = pneg %p1501_p8 }
 0xa1a   : > { %p1508_p0 = por %p1507_p13, %p1506_p12 }
 0xa1c   : > { %p1509_p1 = pnand %p1508_p0, %p1502_p9 }
 0xa1e   : > { %1512 = shalt.err (!%p1509_p1)
}
 0xa1f   : > { %1409 = dma.vmem_to_hbm [thread:$0]  (%p1685_p5), %s1904_s15, 128, %s1902_s16, %s1143_s21  }
 0xa20 PF: > { %p1415_p2 = scmp.ge.s32.totalorder %s1551_s28, 2  ;;  %s1168_s22 = sand.u32 1, %s1539_s25  }
 0xa21   : > { %s1169_s23 = scalar_lea.sflag [#allocation9], %s1168_s22 }
 0xa22   : > { %p1412_p3 = pnand %p1415_p2, %p1689_p6 }
 0xa24   : > { %1534 = dma.done.wait (!%p1412_p3), %s1169_s23, 128  }
 0xa25   : > { %1536 = vsyncadd (!%p1412_p3), %s1169_s23, 4294967168  ;;  %s1974_s0 = sld [smem:[#allocation11_spill]]  ;;  %p23_p4 = scmp.ge.s32.totalorder %s1672_s14, 4  }
 0xa26   : > { %s1975_s25 = smov %s1543_s26  ;;  %s1976_s26 = smov %s1547_s27 }
 0xa27   : > { %s1978_s28 = smov %s1672_s14  ;;  %25 = sbr.rel (!%p23_p4) target bundleno = 6 (0x6), region = 141 }
 0xa2b   : > { %s1977_s27 = smov %s1974_s0 }
 0xa2e   :  { %1174 = vsyncpa [#allocation9], 1 }
 0xa2f   :  { %1176 = vsyncpa [#allocation9 + $0x1], 1 }

// kernel: tpu_custom_call.1
= control target key start
LH: loop header
LB: loop body
LE: loop exit
PB: predicated region body
PF: predicated region fallthrough
CT: control target
= control target key end

     0   :  { %s1949_s0 = inlined_call_operand.vmem [shape: f32[2,8,32], index: 0, kind: input, shape index: {}]   ;;  %s1950_s1 = inlined_call_operand.vmem [shape: f32[1,32], index: 1, kind: input, shape index: {}]   ;;  %s1951_s2 = inlined_call_operand.vmem [shape: f32[1,32], index: 2, kind: input, shape index: {}]   ;;  %s1952_s3 = inlined_call_operand.vmem [shape: f32[32,96], index: 3, kind: input, shape index: {}]   ;;  %s1953_s4 = inlined_call_operand.vmem [shape: f32[1,96], index: 4, kind: input, shape index: {}]   ;;  %s1954_s5 = inlined_call_operand.vmem [shape: f32[32,32], index: 5, kind: input, shape index: {}]   ;;  %s1955_s6 = inlined_call_operand.vmem [shape: f32[1,32], index: 6, kind: input, shape index: {}]   ;;  %s1956_s7 = inlined_call_operand.vmem [shape: f32[1,32], index: 7, kind: input, shape index: {}]   ;;  %s1957_s8 = inlined_call_operand.vmem [shape: f32[1,32], index: 8, kind: input, shape index: {}]   ;;  %s1958_s9 = inlined_call_operand.vmem [shape: f32[32,128], index: 9, kind: input, shape index: {}]   ;;  %s1959_s10 = inlined_call_operand.vmem [shape: f32[1,128], index: 10, kind: input, shape index: {}]   ;;  %s1960_s11 = inlined_call_operand.vmem [shape: f32[128,32], index: 11, kind: input, shape index: {}]   ;;  %s1961_s12 = inlined_call_operand.vmem [shape: f32[1,32], index: 12, kind: input, shape index: {}]   ;;  %s1962_s13 = inlined_call_operand.hbm [shape: f32[2,8,32], index: 13, kind: output, shape index: {}]  }
   0x1   :  { %1964 = sst [smem:[#allocation12_spill]] %s1949_s0 }
   0x2   :  { %1965 = sst [smem:[#allocation13_spill]] %s1950_s1 }
   0x3   :  { %18 = vsyncpa [#allocation9], 0 }
   0x4   :  { %20 = vsyncpa [#allocation9 + $0x1], 0  ;;  %s1647_s25 = smov 0   ;;  %s1649_s26 = smov 0  }
   0x5   :  { %s1651_s27 = smov 0   ;;  %s1653_s28 = smov 0  }
   0x6 LB: > { %s1668_s29 = sadd.s32 4294967295, %s1551_s28   ;;  %s1228_s30 = sadd.s32 4294967294, %s1551_s28   ;;  %s1551_s28 = sphi %s1653_s28, %s1978_s28   ;;  %s1547_s27 = sphi %s1651_s27, %s1977_s27   ;;  %s1543_s26 = sphi %s1649_s26, %s1976_s26   ;;  %s1539_s25 = sphi %s1647_s25, %s1975_s25  }
   0x7   : > { %s1672_s14 = sadd.s32 1, %s1551_s28   ;;  %s311_s15 = sadd.s32 1, %s1547_s27 }
   0x8   : > { %s308_s16 = ssub.s32 %s1551_s28, %s1672_s14  ;;  %p321_p0 = scmp.ne.s32.totalorder %s1547_s27, %s1543_s26 }
   0x9   : > { %p309_p1 = scmp.eq.s32.totalorder %s308_s16, 0  ;;  %p322_p2 = scmp.eq.s32.totalorder %s1668_s29, 1 }
   0xa   : > { %p327_p3 = scmp.ne.s32.totalorder %s1543_s26, %s1539_s25  ;;  %p328_p4 = scmp.eq.s32.totalorder %s1228_s30, 1 }
   0xb   : > { %s1683_s17 = scalar_select %p309_p1, %s1547_s27, %s311_s15  }
   0xc   : > { %p1685_p5 = por %p322_p2, %p321_p0  ;;  %p1689_p6 = por %p328_p4, %p327_p3 }
   0xd   : > { %1966 = sst [smem:[#allocation11_spill]] %s1683_s17  ;;  %p1231_p7 = scmp.ge.s32.totalorder %s1551_s28, 1 }
   0xe   : > { %p389_p8 = scmp.lt.s32.totalorder %s1551_s28, 3 }
  0x10   : > { %p390_p9 = pnand %p1231_p7, %p389_p8 }
  0x11   : > { %p432_p10 = scmp.lt.s32.totalorder (!%p390_p9), %s1668_s29, 1  ;;  %vm439_vm0 = vcmask (!%p390_p9), 261120   ;;  %s1969_s0 = sld [smem:[#allocation12_spill]] (!%p390_p9)  ;;  %v468_v7 = vld [vmem:[%s1952_s3] sm:$0xff] (!%p390_p9)  ;;  %v469_v8 = vld [vmem:[%s1952_s3 + $0x8] sm:$0xff] (!%p390_p9)  ;;  %v470_v9 = vld [vmem:[%s1952_s3 + $0x10] sm:$0xff] (!%p390_p9)  ;;  %v632_v29 = vlaneseq (!%p390_p9) }
  0x12   : > { %393 = sbr.rel (%p390_p9) target bundleno = 2592 (0xa20), region = 72  ;;  %s1963_s30 = sand.u32 (!%p390_p9), 1, %s1543_s26   ;;  %v1557_v10 = vmov (!%p390_p9), 0.0|0.0   ;;  %v1368_v11 = vpack.c.bf16 (!%p390_p9), %v469_v8, %v468_v7  ;;  %v471_v12 = vld [vmem:[%s1952_s3 + $0x18] sm:$0xff] (!%p390_p9)  ;;  %vm1558_vm1 = vmmov (!%p390_p9), 0   ;;  %v1559_v13 = vmov (!%p390_p9), 0.0  }
  0x13   : > { %1367 = vmatprep.subr.bf16.mxu0 (!%p390_p9), %v1557_v10  ;;  %1297 = vmatprep.mubr.msk.f32.mxu0 (!%p390_p9), %vm1558_vm1, %v1559_v13  ;;  %v1371_v14 = vpack.c.bf16 (!%p390_p9), %v471_v12, %v470_v9  ;;  %s1970_s1 = sld [smem:[#allocation13_spill]] (!%p390_p9)  ;;  %v1235_v21 = vld [vmem:[%s1951_s2] ss:$0 sm:$0xff] (!%p390_p9)  ;;  %vm552_vm2 = vcmask (!%p390_p9), 785408   ;;  %vm555_vm3 = vcmask (!%p390_p9), 64512   ;;  %s1560_s22 = smov (!%p390_p9), 120  }
  0x14   : > { %1369 = vmatpush3.bf16.msra.mxu0 (!%p390_p9), %v1368_v11  ;;  %v1236_v24 = vld [vmem:[%s1953_s4] ss:$0 sm:$0xff] (!%p390_p9)  ;;  %s1561_s23 = smov (!%p390_p9), 96   ;;  %s1562_s15 = smov (!%p390_p9), 72   ;;  %v1738_v30 = vshrl.u32 (!%p390_p9), %v632_v29, 7  ;;  %v1740_v31 = vand.u32 (!%p390_p9), 127, %v632_v29 }
  0x15   : > { %1370 = vmatprep.subr.bf16.mxu0 (!%p390_p9), %v1557_v10  ;;  %s1563_s16 = smov (!%p390_p9), 64   ;;  %s1565_s17 = smov (!%p390_p9), 56  }
  0x16   : > { %vm636_vm4 = vcmp.le.s32.totalorder (!%p390_p9), %v1740_v31, %v1738_v30 }
  0x18   : > { %1372 = vmatpush3.bf16.msra.mxu0 (!%p390_p9), %v1371_v14 }
  0x19   : > { %s433_s20 = scalar_select %p432_p10, %s1668_s29, 1  ;;  %v1234_v19 = vld [vmem:[%s1970_s1] ss:$0 sm:$0xff] }
  0x1b   : > { %s1233_s21 = sshll.u32 %s433_s20, 3  ;;  %s1566_s20 = smov 112  }
  0x1c   : > { %s435_s24 = scalar_lea.vmem %s1969_s0, %s1233_s21  ;;  %s1564_s0 = smov 88  }
  0x1d   : > { %v1700_v0 = vld [vmem:[%s435_s24] sm:$0xff]  ;;  %s1718_s24 = sshll.u32 %s1963_s30, 3  ;;  %s1567_s21 = smov 80  }
  0x1e   : > { %v440_v1 = vsel %vm439_vm0, %v1700_v0, 0.0 }
  0x1f   : > { %441 = vadd.xlane.f32.xlu0 %v440_v1 }
  0xac   : > { %v442_v2 = vpop.xlane.xlu0 %441 }
  0xad   : > { %v444_v3 = vmul.f32 0.03125, %v442_v2 }
  0xaf   : > { %v445_v4 = vsub.f32 %v1700_v0, %v444_v3 }
  0xb1   : > { %v446_v5 = vmul.f32 %v445_v4, %v445_v4 }
  0xb3   : > { %v447_v6 = vsel %vm439_vm0, %v446_v5, 0.0 }
  0xb4   : > { %448 = vadd.xlane.f32.xlu0 %v447_v6 }
 0x141   : > { %v449_v15 = vpop.xlane.xlu0 %448 }
 0x142   : > { %v450_v16 = vmul.f32 0.03125, %v449_v15 }
 0x144   : > { %v451_v17 = vadd.f32 1e-05, %v450_v16 }
 0x146   : > { %1475 = vrsqrt.f32 %v451_v17 }
 0x150   : > { %v1476_v18 = vpop.eup %1475 }
 0x151   : > { %v453_v20 = vmul.f32 %v1476_v18, %v445_v4 }
 0x153   : > { %v460_v22 = vmul.f32 %v1234_v19, %v453_v20 }
 0x155   : > { %v467_v23 = vadd.f32 %v1235_v21, %v460_v22 }
 0x157   : > { %1298 = vmatmul.mubr.msk.f32.vlgmr.msra.gmra.mrb[0].mxu0 %vm439_vm0, %v467_v23 }
 0x22a   : > { %v548_v25 = vpop.f32.mrb[0].mxu0 }
 0x22b   : > { %v549_v26 = vadd.f32 %v1236_v24, %v548_v25  ;;  %v1299_v27 = vpop.f32.mrb[1].mxu0 }
 0x22d   : > { %553 = vst.msk [vmem:[#allocation2] sm:$0xff] %vm552_vm2, %v549_v26 }
 0x234   : > { %v554_v28 = vld [vmem:[#allocation2] sm:$0xff] }
 0x235   : > { %556 = vst.msk [vmem:[#allocation3] sm:$0xff] %vm555_vm3, %v554_v28  ;;  %571 = vrot.lane.b32.xlu0 %v554_v28, %s1560_s22  ;;  %559 = vrot.lane.b32.xlu1 %v554_v28, %s1561_s23  ;;  %s1568_s22 = smov 48   ;;  %s1569_s23 = smov 104  }
 0x239   : > { %620 = vrot.lane.b32.xlu0 %v554_v28, %s1562_s15  ;;  %565 = vrot.lane.b32.xlu1 %v554_v28, %s1563_s16  ;;  %s1570_s15 = smov 40  }
 0x23d   : > { %578 = vrot.lane.b32.xlu1 %v554_v28, %s1564_s0  ;;  %s1756_s0 = smov 0  }
 0x241   : > { %585 = vrot.lane.b32.xlu1 %v554_v28, %s1565_s17 }
 0x245   : > { %592 = vrot.lane.b32.xlu1 %v554_v28, %s1566_s20 }
 0x249   : > { %599 = vrot.lane.b32.xlu1 %v554_v28, %s1567_s21 }
 0x24d   : > { %606 = vrot.lane.b32.xlu1 %v554_v28, %s1568_s22 }
 0x251   : > { %613 = vrot.lane.b32.xlu1 %v554_v28, %s1569_s23 }
 0x255   : > { %627 = vrot.lane.b32.xlu1 %v554_v28, %s1570_s15 }
 0x2a7   : > { %v572_v32 = vpop.permute.xlu0 %571  ;;  %v560_v33 = vpop.permute.xlu1 %559 }
 0x2a8   : > { %575 = vst.msk [vmem:[#allocation3 + $0x8] sm:$0xff] %vm555_vm3, %v572_v32  ;;  %562 = vst.msk [vmem:[#allocation4] sm:$0xff] %vm555_vm3, %v560_v33 }
 0x2ab   : > { %v621_v34 = vpop.permute.xlu0 %620  ;;  %v566_v35 = vpop.permute.xlu1 %565 }
 0x2ac   : > { %624 = vst.msk [vmem:[#allocation4 + $0x18] sm:$0xff] %vm555_vm3, %v621_v34  ;;  %568 = vst.msk [vmem:[#allocation5] sm:$0xff] %vm555_vm3, %v566_v35 }
 0x2af   : > { %v579_v36 = vpop.permute.xlu1 %578 }
 0x2b0   : > { %582 = vst.msk [vmem:[#allocation4 + $0x8] sm:$0xff] %vm555_vm3, %v579_v36 }
 0x2b3   : > { %v586_v37 = vpop.permute.xlu1 %585 }
 0x2b4   : > { %589 = vst.msk [vmem:[#allocation5 + $0x8] sm:$0xff] %vm555_vm3, %v586_v37 }
 0x2b7   : > { %v593_v38 = vpop.permute.xlu1 %592 }
 0x2b8   : > { %596 = vst.msk [vmem:[#allocation3 + $0x10] sm:$0xff] %vm555_vm3, %v593_v38 }
 0x2bb   : > { %v600_v39 = vpop.permute.xlu1 %599 }
 0x2bc   : > { %603 = vst.msk [vmem:[#allocation4 + $0x10] sm:$0xff] %vm555_vm3, %v600_v39 }
 0x2bf   : > { %v607_v40 = vpop.permute.xlu1 %606 }
 0x2c0   : > { %610 = vst.msk [vmem:[#allocation5 + $0x10] sm:$0xff] %vm555_vm3, %v607_v40 }
 0x2c3   : > { %v614_v41 = vpop.permute.xlu1 %613 }
 0x2c4   : > { %617 = vst.msk [vmem:[#allocation3 + $0x18] sm:$0xff] %vm555_vm3, %v614_v41 }
 0x2c7   : > { %v628_v42 = vpop.permute.xlu1 %627 }
 0x2c8   : > { %631 = vst.msk [vmem:[#allocation5 + $0x18] sm:$0xff] %vm555_vm3, %v628_v42 }
 0x2c9 LB: >> { %v1571_v43 = vmov 0.0   ;;  %vm1572_vm5 = vmmov 0   ;;  %s1762_s17 = sshll.u32 %s1555_s0, 3  ;;  %s642_s0 = sadd.s32 1, %s1555_s0   ;;  %s1555_s0 = sphi %s1756_s0, %s642_s0  }
 0x2ca   : >> { %1300 = vmatprep.subr.mxu0 %v1571_v43  ;;  %1302 = vmatprep.mubr.msk.f32.mxu0 %vm1572_vm5, %v1571_v43  ;;  %s646_s20 = scalar_lea.vmem [#allocation4], %s1762_s17  ;;  %s644_s21 = scalar_lea.vmem [#allocation3], %s1762_s17 }
 0x2cb   : >> { %1305 = vmatprep.subr.mxu1 %v1571_v43  ;;  %1307 = vmatprep.mubr.msk.f32.mxu1 %vm1572_vm5, %v1571_v43  ;;  %v647_v44 = vld [vmem:[%s646_s20] sm:$0xff]  ;;  %s648_s22 = scalar_lea.vmem [#allocation5], %s1762_s17  ;;  %s811_s23 = scalar_lea.vmem [#allocation6], %s1762_s17 }
 0x2cc   : >> { %1301 = vmatpush3.xpose.msk.msra.mxu0 %vm555_vm3, %v647_v44  ;;  %v645_v45 = vld [vmem:[%s644_s21] sm:$0xff]  ;;  %p639_p11 = scmp.ge.s32.totalorder %s642_s0, 4  }
 0x2cd   : > { %s1573_s15 = smov (%p639_p11), 8   ;;  %v840_v1 = vld [vmem:[%s1954_s5] sm:$0xff] (%p639_p11)  ;;  %v841_v2 = vld [vmem:[%s1954_s5 + $0x8] sm:$0xff] (%p639_p11)  ;;  %1385 = vmatprep.subr.bf16.mxu0 (%p639_p11), %v1557_v10  ;;  %s1574_s0 = smov (%p639_p11), 24   ;;  %v842_v5 = vld [vmem:[%s1954_s5 + $0x10] sm:$0xff] (%p639_p11)  ;;  %vm821_vm6 = vcmask (%p639_p11), 130112  }
 0x2ce   : > { %v1374_v4 = vpack.c.bf16 (%p639_p11), %v841_v2, %v840_v1  ;;  %v843_v6 = vld [vmem:[%s1954_s5 + $0x18] sm:$0xff] (%p639_p11)  ;;  %s1575_s17 = smov (%p639_p11), 16   ;;  %vm829_vm7 = vcmask (%p639_p11), 195712   ;;  %vm837_vm8 = vcmask (%p639_p11), 261312   ;;  %v1242_v14 = vld [vmem:[%s1955_s6] ss:$0 sm:$0xff] (%p639_p11) }
 0x2cf   : >> { %1303 = vmatmul.mubr.msk.f32.vlgmr.msra.gmra.mrb[0].mxu0 %vm555_vm3, %v645_v45  ;;  %v649_v55 = vld [vmem:[%s648_s22] sm:$0xff]  ;;  %v1377_v7 = vpack.c.bf16 (%p639_p11), %v843_v6, %v842_v5  ;;  %v956_v25 = vld [vmem:[%s1958_s9 + $0x10] sm:$0xff] (%p639_p11)  ;;  %v957_v27 = vld [vmem:[%s1958_s9 + $0x18] sm:$0xff] (%p639_p11) }
 0x2d0   : >> { %1306 = vmatpush3.msra.mxu1 %v649_v55  ;;  %1364 = vmatprep.mubr.msk.f32.mxu0 (%p639_p11), %vm1558_vm1, %v1559_v13  ;;  %v954_v24 = vld [vmem:[%s1958_s9] sm:$0xff] (%p639_p11)  ;;  %v1383_v28 = vpack.c.bf16 (%p639_p11), %v957_v27, %v956_v25  ;;  %v1048_v30 = vld [vmem:[%s1960_s11 + $0x8] sm:$0xff] (%p639_p11)  ;;  %v1049_v41 = vld [vmem:[%s1960_s11 + $0x10] sm:$0xff] (%p639_p11) }
 0x2d1   : > { %1373 = vmatprep.subr.bf16.mxu1 (%p639_p11), %v1557_v10  ;;  %v1047_v29 = vld [vmem:[%s1960_s11] sm:$0xff] (%p639_p11)  ;;  %v1050_v42 = vld [vmem:[%s1960_s11 + $0x18] sm:$0xff] (%p639_p11)  ;;  %v1052_v45 = vld [vmem:[%s1960_s11 + $0x28] sm:$0xff] (%p639_p11) }
 0x2d2   : > { %v1386_v31 = vpack.c.bf16 (%p639_p11), %v1048_v30, %v1047_v29  ;;  %v1244_v36 = vld [vmem:[%s1956_s7] ss:$0 sm:$0xff] (%p639_p11)  ;;  %v1389_v43 = vpack.c.bf16 (%p639_p11), %v1050_v42, %v1049_v41 }
 0x2d3   : > { %v1245_v38 = vld [vmem:[%s1957_s8] ss:$0 sm:$0xff] (%p639_p11) }
 0x2d4   : > { %1387 = vmatpush3.bf16.msra.mxu0 (%p639_p11), %v1386_v31  ;;  %v1051_v44 = vld [vmem:[%s1960_s11 + $0x20] sm:$0xff] (%p639_p11) }
 0x2d5   : > { %1388 = vmatprep.subr.bf16.mxu0 (%p639_p11), %v1557_v10 }
 0x2d8   : > { %1390 = vmatpush3.bf16.msra.mxu0 (%p639_p11), %v1389_v43 }
 0x2d9   : > { %1391 = vmatprep.subr.bf16.mxu0 (%p639_p11), %v1557_v10 }
 0x3a2   : >> { %v722_v46 = vpop.f32.mrb[0].mxu0 }
 0x3a3   : >> { %v726_v47 = vsel %vm636_vm4, %v722_v46, -1e+30  ;;  %v1304_v48 = vpop.f32.mrb[1].mxu0  ;;  %v1392_v46 = vpack.c.bf16 (%p639_p11), %v1052_v45, %v1051_v44 }
 0x3a4   : >> { %v727_v49 = vsel %vm555_vm3, %v726_v47, -inf  ;;  %v1054_v48 = vld [vmem:[%s1960_s11 + $0x38] sm:$0xff] (%p639_p11) }
 0x3a5   : >> { %728 = vmax.xlane.f32.xlu0 %v727_v49  ;;  %1393 = vmatpush3.bf16.msra.mxu0 (%p639_p11), %v1392_v46 }
 0x3a6   : > { %1394 = vmatprep.subr.bf16.mxu0 (%p639_p11), %v1557_v10 }
 0x432   : >> { %v729_v50 = vpop.xlane.xlu0 %728 }
 0x433   : >> { %v730_v51 = vsub.f32 %v726_v47, %v729_v50  ;;  %v1053_v47 = vld [vmem:[%s1960_s11 + $0x30] sm:$0xff] (%p639_p11)  ;;  %v1055_v50 = vld [vmem:[%s1960_s11 + $0x40] sm:$0xff] (%p639_p11) }
 0x434   : > { %v1395_v49 = vpack.c.bf16 (%p639_p11), %v1054_v48, %v1053_v47 }
 0x435   : >> { %v731_v52 = vmul.f32 1.442695, %v730_v51  ;;  %v1056_v51 = vld [vmem:[%s1960_s11 + $0x48] sm:$0xff] (%p639_p11) }
 0x436   : > { %1396 = vmatpush3.bf16.msra.mxu0 (%p639_p11), %v1395_v49 }
 0x437   : >> { %1477 = vpow2.f32 %v731_v52  ;;  %v1398_v52 = vpack.c.bf16 (%p639_p11), %v1056_v51, %v1055_v50  ;;  %1397 = vmatprep.subr.bf16.mxu0 (%p639_p11), %v1557_v10 }
 0x43a   : > { %1399 = vmatpush3.bf16.msra.mxu0 (%p639_p11), %v1398_v52 }
 0x43b   : > { %1400 = vmatprep.subr.bf16.mxu0 (%p639_p11), %v1557_v10 }
 0x441   : >> { %v1478_v53 = vpop.eup %1477 }
 0x442   : >> { %v733_v54 = vsel %vm555_vm3, %v1478_v53, 0.0 }
 0x443   : >> { %734 = vadd.xlane.f32.xlu0 %v733_v54  ;;  %v1058_v54 = vld [vmem:[%s1960_s11 + $0x58] sm:$0xff] (%p639_p11) }
 0x4d0   : >> { %v735_v56 = vpop.xlane.xlu0 %734 }
 0x4d1   : >> { %1479 = vrcp.f32 %v735_v56  ;;  %v1059_v56 = vld [vmem:[%s1960_s11 + $0x60] sm:$0xff] (%p639_p11) }
 0x4db   : >> { %v1480_v57 = vpop.eup %1479 }
 0x4dc   : >> { %v737_v58 = vmul.f32 %v1480_v57, %v1478_v53  ;;  %v1057_v53 = vld [vmem:[%s1960_s11 + $0x50] sm:$0xff] (%p639_p11)  ;;  %v1060_v57 = vld [vmem:[%s1960_s11 + $0x68] sm:$0xff] (%p639_p11) }
 0x4dd   : > { %v1401_v55 = vpack.c.bf16 (%p639_p11), %v1058_v54, %v1057_v53 }
 0x4de   : >> { %1308 = vmatmul.mubr.msk.f32.vlgmr.msra.gmra.mrb[0].mxu1 %vm555_vm3, %v737_v58  ;;  %v1404_v58 = vpack.c.bf16 (%p639_p11), %v1060_v57, %v1059_v56 }
 0x4df   : > { %1318 = vmatprep.mubr.msk.f32.mxu1 (%p639_p11), %vm1558_vm1, %v1559_v13  ;;  %1375 = vmatpush3.bf16.msra.mxu1 (%p639_p11), %v1374_v4 }
 0x4e0   : > { %1376 = vmatprep.subr.bf16.mxu1 (%p639_p11), %v1557_v10  ;;  %1402 = vmatpush3.bf16.msra.mxu0 (%p639_p11), %v1401_v55 }
 0x4e1   : > { %1403 = vmatprep.subr.bf16.mxu0 (%p639_p11), %v1557_v10 }
 0x4e3   : > { %1378 = vmatpush3.bf16.msra.mxu1 (%p639_p11), %v1377_v7 }
 0x4e4   : > { %1379 = vmatprep.subr.bf16.mxu1 (%p639_p11), %v1557_v10  ;;  %1405 = vmatpush3.bf16.msra.mxu0 (%p639_p11), %v1404_v58 }
 0x4e5   : > { %1406 = vmatprep.subr.bf16.mxu0 (%p639_p11), %v1557_v10 }
 0x5ac   : > { %641 = sbr.rel (!%p639_p11) target bundleno = 713 (0x2c9), region = 130 }
 0x5b1   : >> { %v807_v59 = vpop.f32.mrb[0].mxu1 }
 0x5b2   : >> { %812 = vst.msk [vmem:[%s811_s23] sm:$0xff] %vm555_vm3, %v807_v59  ;;  %v1309_v60 = vpop.f32.mrb[1].mxu1  ;;  %v1061_v59 = vld [vmem:[%s1960_s11 + $0x70] sm:$0xff] (%p639_p11)  ;;  %s1971_s23 = scalar_lea.vmem (%p639_p11), [#allocation8], %s1718_s24 }
 0x5b3   : > { %v1062_v60 = vld [vmem:[%s1960_s11 + $0x78] sm:$0xff]  ;;  %s1972_s20 = smov %s1971_s23 }
 0x5b9   : > { %v816_v61 = vld [vmem:[#allocation6 + $0x8] sm:$0xff]  ;;  %v832_v62 = vld [vmem:[#allocation6 + $0x18] sm:$0xff]  ;;  %v813_v63 = vld [vmem:[#allocation6] sm:$0xff] }
 0x5ba   : > { %818 = vrot.lane.b32.xlu0 %v816_v61, %s1573_s15  ;;  %v824_v3 = vld [vmem:[#allocation6 + $0x10] sm:$0xff]  ;;  %834 = vrot.lane.b32.xlu1 %v832_v62, %s1574_s0  ;;  %814 = vst.msk [vmem:[#allocation7] sm:$0xff] %vm555_vm3, %v813_v63  ;;  %v1407_v61 = vpack.c.bf16 %v1062_v60, %v1061_v59  ;;  %v1246_v62 = vld [vmem:[%s1959_s10] ss:$0 sm:$0xff]  ;;  %s1250_s0 = sshll.u32 %s1668_s29, 7  ;;  %s1156_s15 = sshll.u32 %s1971_s23, 4  ;;  %s1904_s15 = int_to_ptr.vmem [resolvable:$true] %s1156_s15 }
 0x5bb   : > { %s1902_s16 = scalar_lea.hbm %s1962_s13, %s1250_s0  ;;  %s1973_s29 = sand.u32 1, %s1543_s26  }
 0x5bc   : > { %1408 = vmatpush3.bf16.msra.mxu0 %v1407_v61  ;;  %s1143_s21 = scalar_lea.sflag [#allocation9], %s1973_s29  ;;  %s1485_s22 = scalar_lea.vmem %s1904_s15, 128 }
 0x5bd   : > { %p1486_p12 = scmp.ne.s32.totalorder %s1904_s15, %s1485_s22  ;;  %s1576_s23 = smov [#allocation8]  }
 0x5be   : > { %826 = vrot.lane.b32.xlu0 %v824_v3, %s1575_s17  ;;  %s1489_s1 = sshll.u32 %s1576_s23, 4  ;;  %s1490_s1 = int_to_ptr.vmem [resolvable:$false] %s1489_s1 }
 0x5bf   : > { %p1487_p13 = pnand %p1486_p12, %p1685_p5  ;;  %s1491_s0 = scalar_lea.vmem %s1490_s1, 256 }
 0x5c0   : > { %p1492_p1 = scmp.lt.s32.totalorder %s1904_s15, %s1490_s1  ;;  %p1493_p2 = scmp.lt.s32.totalorder %s1491_s0, %s1485_s22 }
 0x5c1   : > { %p1488_p0 = pneg %p1487_p13 }
 0x5c2   : > { %p1494_p3 = por %p1493_p2, %p1492_p1 }
 0x5c4   : > { %p1495_p4 = pnand %p1494_p3, %p1488_p0 }
 0x62c   : > { %v819_v8 = vpop.permute.xlu0 %818  ;;  %v835_v9 = vpop.permute.xlu1 %834 }
 0x62d   : > { %822 = vst.msk [vmem:[#allocation7] sm:$0xff] %vm821_vm6, %v819_v8 }
 0x630   : > { %v827_v11 = vpop.permute.xlu0 %826 }
 0x631   : > { %830 = vst.msk [vmem:[#allocation7] sm:$0xff] %vm829_vm7, %v827_v11 }
 0x632   : > { %838 = vst.msk [vmem:[#allocation7] sm:$0xff] %vm837_vm8, %v835_v9 }
 0x639   : > { %v839_v12 = vld [vmem:[#allocation7] sm:$0xff] }
 0x63a   : > { %1319 = vmatmul.mubr.msk.f32.vlgmr.msra.gmra.mrb[0].mxu1 %vm439_vm0, %v839_v12  ;;  %v1248_v12 = vld [vmem:[%s1961_s12] ss:$0 sm:$0xff] }
 0x63b   : > { %1329 = vmatprep.mubr.msk.f32.mxu1 %vm1558_vm1, %v1559_v13 }
 0x70d   : > { %v920_v15 = vpop.f32.mrb[0].mxu1 }
 0x70e   : > { %v921_v16 = vadd.f32 %v1242_v14, %v920_v15  ;;  %v1320_v17 = vpop.f32.mrb[1].mxu1 }
 0x710   : > { %v1808_v18 = vadd.f32 %v921_v16, %v1700_v0  ;;  %v955_v0 = vld [vmem:[%s1958_s9 + $0x8] sm:$0xff] }
 0x711   : > { %v1380_v26 = vpack.c.bf16 %v955_v0, %v954_v24 }
 0x712   : > { %v927_v19 = vsel %vm439_vm0, %v1808_v18, 0.0 }
 0x713   : > { %928 = vadd.xlane.f32.xlu1 %v927_v19  ;;  %1381 = vmatpush3.bf16.msra.mxu1 %v1380_v26 }
 0x714   : > { %1382 = vmatprep.subr.bf16.mxu1 %v1557_v10 }
 0x717   : > { %1384 = vmatpush3.bf16.msra.mxu1 %v1383_v28 }
 0x7a0   : > { %v929_v20 = vpop.xlane.xlu1 %928 }
 0x7a1   : > { %v930_v21 = vmul.f32 0.03125, %v929_v20 }
 0x7a3   : > { %v931_v22 = vsub.f32 %v1808_v18, %v930_v21 }
 0x7a5   : > { %v932_v23 = vmul.f32 %v931_v22, %v931_v22 }
 0x7a7   : > { %v933_v13 = vsel %vm439_vm0, %v932_v23, 0.0 }
 0x7a8   : > { %934 = vadd.xlane.f32.xlu0 %v933_v13 }
 0x835   : > { %v935_v32 = vpop.xlane.xlu0 %934 }
 0x836   : > { %v936_v33 = vmul.f32 0.03125, %v935_v32 }
 0x838   : > { %v937_v34 = vadd.f32 1e-05, %v936_v33 }
 0x83a   : > { %1481 = vrsqrt.f32 %v937_v34 }
 0x844   : > { %v1482_v35 = vpop.eup %1481 }
 0x845   : > { %v939_v37 = vmul.f32 %v1482_v35, %v931_v22 }
 0x847   : > { %v946_v39 = vmul.f32 %v1244_v36, %v939_v37 }
 0x849   : > { %v953_v40 = vadd.f32 %v1245_v38, %v946_v39 }
 0x84b   : > { %1330 = vmatmul.mubr.msk.f32.vlgmr.msra.gmra.mrb[2].mxu1 %vm439_vm0, %v953_v40 }
 0x91e   : > { %v1034_v63 = vpop.f32.mrb[2].mxu1 }
 0x91f   : > { %v1035_v1 = vadd.f32 %v1246_v62, %v1034_v63  ;;  %v1331_v2 = vpop.f32.mrb[3].mxu1 }
 0x921   : > { %v1039_v3 = vmul.f32 0.044715, %v1035_v1  ;;  %v1038_v10 = vmul.f32 0.5, %v1035_v1 }
 0x923   : > { %v1040_v4 = vmul.f32 %v1039_v3, %v1035_v1 }
 0x925   : > { %v1041_v5 = vmul.f32 %v1040_v4, %v1035_v1 }
 0x927   : > { %v1042_v6 = vadd.f32 %v1041_v5, %v1035_v1 }
 0x929   : > { %v1043_v7 = vmul.f32 0.7978846, %v1042_v6 }
 0x92b   : > { %1483 = vtanh.f32 %v1043_v7 }
 0x935   : > { %v1484_v8 = vpop.eup %1483 }
 0x936   : > { %v1045_v9 = vadd.f32 1.0, %v1484_v8 }
 0x938   : > { %v1046_v11 = vmul.f32 %v1045_v9, %v1038_v10 }
 0x93a   : > { %1365 = vmatmul.mubr.f32.vlgmr.msra.gmra.mrb[0].mxu0 %v1046_v11 }
 0xa0d   : > { %v1136_v14 = vpop.f32.mrb[0].mxu0 }
 0xa0e   : > { %v1137_v15 = vadd.f32 %v1248_v12, %v1136_v14  ;;  %v1366_v16 = vpop.f32.mrb[1].mxu0 }
 0xa10   : > { %v1140_v17 = vadd.f32 %v1137_v15, %v1808_v18 }
 0xa12   : > { %1141 = vst.msk [vmem:[%s1972_s20] sm:$0xff] %vm439_vm0, %v1140_v17 }
 0xa13   : > { %1498 = shalt.err (!%p1495_p4)
}
 0xa14   : > { %s1499_s24 = scalar_lea.hbm %s1902_s16, 128  ;;  %s1503_s20 = scalar_lea.hbm %s1962_s13, 256 }
 0xa15   : > { %p1500_p7 = scmp.ne.s32.totalorder %s1902_s16, %s1499_s24  ;;  %p1504_p10 = scmp.lt.u32.totalorder %s1902_s16, %s1962_s13 }
 0xa16   : > { %p1505_p11 = scmp.lt.u32.totalorder %s1503_s20, %s1499_s24  ;;  %p1507_p13 = scmp.lt.u32.totalorder %s1499_s24, %s1902_s16 }
 0xa17   : > { %p1501_p8 = pnand %p1500_p7, %p1685_p5 }
 0xa18   : > { %p1506_p12 = por %p1505_p11, %p1504_p10 }
 0xa19   : > { %p1502_p9 = pneg %p1501_p8 }
 0xa1a   : > { %p1508_p0 = por %p1507_p13, %p1506_p12 }
 0xa1c   : > { %p1509_p1 = pnand %p1508_p0, %p1502_p9 }
 0xa1e   : > { %1512 = shalt.err (!%p1509_p1)
}
 0xa1f   : > { %1409 = dma.vmem_to_hbm [thread:$0]  (%p1685_p5), %s1904_s15, 128, %s1902_s16, %s1143_s21  }
 0xa20 PF: > { %p1415_p2 = scmp.ge.s32.totalorder %s1551_s28, 2  ;;  %s1168_s22 = sand.u32 1, %s1539_s25  }
 0xa21   : > { %s1169_s23 = scalar_lea.sflag [#allocation9], %s1168_s22 }
 0xa22   : > { %p1412_p3 = pnand %p1415_p2, %p1689_p6 }
 0xa24   : > { %1534 = dma.done.wait (!%p1412_p3), %s1169_s23, 128  }
 0xa25   : > { %1536 = vsyncadd (!%p1412_p3), %s1169_s23, 4294967168  ;;  %s1974_s0 = sld [smem:[#allocation11_spill]]  ;;  %p23_p4 = scmp.ge.s32.totalorder %s1672_s14, 4  }
 0xa26   : > { %s1975_s25 = smov %s1543_s26  ;;  %s1976_s26 = smov %s1547_s27 }
 0xa27   : > { %s1978_s28 = smov %s1672_s14  ;;  %25 = sbr.rel (!%p23_p4) target bundleno = 6 (0x6), region = 141 }
 0xa2b   : > { %s1977_s27 = smov %s1974_s0 }
 0xa2e   :  { %1174 = vsyncpa [#allocation9], 1 }
 0xa2f   :  { %1176 = vsyncpa [#allocation9 + $0x1], 1 }

</bundles_post_ra>
